<compile_context>
chip_gen: v6e
topology: v6e:2x2x1
jax: 0.10.0
libtpu: 0.0.40
codegen_flags: <defaults>
</compile_context>

<pallas_src>
import functools
import math

import jax
import jax.numpy as jnp
import numpy as np
from jax.experimental import pallas as pl
from jax.experimental.pallas import tpu as pltpu

_SQRT2_INV = 1.0 / math.sqrt(2.0)
_GN_EPS = 1e-5                       # torch GroupNorm default eps


def _cdiv(a, b):
    return -(-a // b)


def _round_up(a, b):
    return _cdiv(a, b) * b


def _gelu_exact(x):
    # nn.GELU() default = erf-based GELU (computed in f32 before any bf16 cast)
    return 0.5 * x * (1.0 + jax.lax.erf(x * _SQRT2_INV))


def _chip_defaults():
    """Generation-aware VMEM budget and time-tile caps."""
    cap = None
    try:
        cap = int(pltpu.get_tpu_info().vmem_capacity_bytes)
    except Exception:
        cap = None
    if cap is not None and cap > 96 * 2 ** 20:
        # v5e / v6e: 128 MiB VMEM -> big tiles, generous scoped limit
        return dict(vmem_limit=100 * 2 ** 20, t_tile_cap=2048, layer0_tile_cap=8192)
    # v7x (64 MiB VMEM) or unknown: leave headroom for Mosaic internals
    return dict(vmem_limit=44 * 2 ** 20, t_tile_cap=1024, layer0_tile_cap=4096)


# ---------------------------------------------------------------------------
# static planner: per-layer tiling so inter-layer pads / trims are never needed
# ---------------------------------------------------------------------------

def _plan(geoms, T, t_tile_cap, layer0_tile_cap):
    """geoms: list of (K, S) per layer.  Walks the stack back-to-front and picks
    each layer's (t_tile, nt, t_pad) so that:
      * t_pad >= logical t_out and >= what the NEXT layer physically reads
        (its padded output extent plus an 8-row halo block, times its stride),
      * t_pad is a multiple of the next layer's stride (free reshape fold),
      * tiles are 16-row aligned (bf16 sublane packing) and halo-block aligned.
    Returns (plans, required physical raw-input length)."""
    L = len(geoms)
    t_log, t = [], T
    for k, s in geoms:
        t = (t - k) // s + 1
        assert t > 0, "input too short for the conv stack"
        t_log.append(t)

    plans = [None] * L
    need_next = 0
    for i in reversed(range(L)):
        k, s = geoms[i]
        kp = _cdiv(k, s)                               # taps after stride folding
        halo_blk = _round_up(kp - 1, 8) if kp > 1 else 0
        align = 16
        if i + 1 < L:
            align = math.lcm(align, geoms[i + 1][1])   # next layer's stride
        if halo_blk:
            align = math.lcm(align, halo_blk)
        cap = layer0_tile_cap if i == 0 else t_tile_cap
        target = max(t_log[i], need_next)
        nt = max(1, _cdiv(target, max(cap, align)))
        if i == 0 and nt > 1 and nt % 2:
            nt += 1                                    # even count -> 2-way stats split
        t_tile = _round_up(_cdiv(target, nt), align)
        t_pad = nt * t_tile
        plans[i] = dict(stride=s, kp=kp, halo=halo_blk, t_out=t_log[i],
                        t_tile=t_tile, nt=nt, t_pad=t_pad)
        need_next = s * (t_pad + halo_blk)
    return plans, need_next


def _fold_weight(w_kio, S, kp):
    """(K, C_in, C_out) -> (kp, S*C_in, C_out) stride-folded weight (zero-padded taps)."""
    K, C_in, C_out = w_kio.shape
    w_p = jnp.pad(w_kio, ((0, kp * S - K), (0, 0), (0, 0)))
    return w_p.reshape(kp, S * C_in, C_out)


# ---------------------------------------------------------------------------
# kernels
# ---------------------------------------------------------------------------

def _conv_taps(x_ref, halo_ref, w_ref, acc_ref, *, kp, t_tile):
    """Stride-1 kp-tap conv of the current tile -> (t_tile, C_out) f32 value.

    Tap 0 is one full-tile MXU dot (local value, no scratch when kp == 1).
    Each extra tap is realised as two row-sliced dots (in-tile window + tiny
    halo window) accumulated into acc_ref via slice updates - no full-tile
    concatenate / relayout of the wide (t_tile, C_f) operand."""
    if kp == 1:
        return jnp.dot(x_ref[...], w_ref[0], preferred_element_type=jnp.float32)
    acc_ref[...] = jnp.dot(x_ref[...], w_ref[0], preferred_element_type=jnp.float32)
    for q in range(1, kp):
        acc_ref[pl.ds(0, t_tile - q), :] += jnp.dot(
            x_ref[pl.ds(q, t_tile - q), :], w_ref[q],
            preferred_element_type=jnp.float32)
        acc_ref[pl.ds(t_tile - q, q), :] += jnp.dot(
            halo_ref[pl.ds(0, q), :], w_ref[q],
            preferred_element_type=jnp.float32)
    return acc_ref[...]


def _conv_tile_kernel(*refs, kp, t_tile, use_affine):
    """One (batch, time-tile) block: conv (+ fused GroupNorm affine) + GELU.

    Ref order: x_tile, [halo_view], weight, [scale, shift], out, [acc_scratch]."""
    i = 0
    x_ref = refs[i]; i += 1
    halo_ref = None
    if kp > 1:
        halo_ref = refs[i]; i += 1
    w_ref = refs[i]; i += 1
    scale_ref = shift_ref = None
    if use_affine:
        scale_ref, shift_ref = refs[i], refs[i + 1]; i += 2
    o_ref = refs[i]; i += 1
    acc_ref = refs[i] if kp > 1 else None

    acc = _conv_taps(x_ref, halo_ref, w_ref, acc_ref, kp=kp, t_tile=t_tile)
    if use_affine:   # fused GroupNorm: x * (gamma*rstd) + (beta - mean*gamma*rstd)
        acc = acc * scale_ref[...] + shift_ref[...]
    o_ref[...] = _gelu_exact(acc).astype(o_ref.dtype)


def _gn_stats_kernel(*refs, kp, t_tile, nt_half, t_out):
    """Layer-0 GroupNorm pass A: accumulate per-(batch, channel, half) sum / ssq
    of the conv output across the 'arbitrary' time axis.  Rows past the logical
    output length are masked (their conv output need not be zero)."""
    i = 0
    x_ref = refs[i]; i += 1
    halo_ref = None
    if kp > 1:
        halo_ref = refs[i]; i += 1
    w_ref = refs[i]; i += 1
    sum_ref, ssq_ref = refs[i], refs[i + 1]; i += 2
    acc_ref = refs[i] if kp > 1 else None

    @pl.when(pl.program_id(2) == 0)
    def _():
        sum_ref[...] = jnp.zeros_like(sum_ref)
        ssq_ref[...] = jnp.zeros_like(ssq_ref)

    acc = _conv_taps(x_ref, halo_ref, w_ref, acc_ref, kp=kp, t_tile=t_tile)
    start = (pl.program_id(1) * nt_half + pl.program_id(2)) * t_tile
    rows = jax.lax.broadcasted_iota(jnp.int32, (t_tile, 1), 0) + start
    acc = jnp.where(rows < t_out, acc, 0.0)
    sum_ref[...] += jnp.sum(acc, axis=0, keepdims=True)
    ssq_ref[...] += jnp.sum(acc * acc, axis=0, keepdims=True)


# ---------------------------------------------------------------------------
# pallas_call wrappers
# ---------------------------------------------------------------------------

def _tiled_conv(x_f, w_f, plan, *, out_dtype, vmem_limit, scale=None, shift=None):
    """Time-tiled stride-1 conv over a stride-folded input (no wrapper pads).

    x_f : (B, T_fold_phys, C_f), already long enough per the planner
    w_f : (kp, C_f, C_out)
    out : (B, t_pad, C_out) = GELU(conv(x_f, w_f) [* scale + shift])"""
    B, _, C_f = x_f.shape
    kp, _, C_out = w_f.shape
    t_tile, nt, t_pad, halo_blk = plan["t_tile"], plan["nt"], plan["t_pad"], plan["halo"]

    in_specs = [pl.BlockSpec((None, t_tile, C_f), lambda b, t: (b, t, 0))]
    args = [x_f]
    if kp > 1:
        hpb = t_tile // halo_blk
        # second view of the SAME array: the halo_blk rows right after this tile
        in_specs.append(pl.BlockSpec((None, halo_blk, C_f),
                                     lambda b, t: (b, (t + 1) * hpb, 0)))
        args.append(x_f)
    in_specs.append(pl.BlockSpec((kp, C_f, C_out), lambda b, t: (0, 0, 0)))
    args.append(w_f)
    use_affine = scale is not None
    if use_affine:
        in_specs += [pl.BlockSpec((None, 1, C_out), lambda b, t: (b, 0, 0)),
                     pl.BlockSpec((None, 1, C_out), lambda b, t: (b, 0, 0))]
        args += [scale, shift]

    scratch = [pltpu.VMEM((t_tile, C_out), jnp.float32)] if kp > 1 else []

    return pl.pallas_call(
        functools.partial(_conv_tile_kernel, kp=kp, t_tile=t_tile,
                          use_affine=use_affine),
        out_shape=jax.ShapeDtypeStruct((B, t_pad, C_out), out_dtype),
        grid=(B, nt),
        in_specs=in_specs,
        out_specs=pl.BlockSpec((None, t_tile, C_out), lambda b, t: (b, t, 0)),
        scratch_shapes=scratch,
        compiler_params=pltpu.CompilerParams(
            dimension_semantics=("parallel", "parallel"),
            vmem_limit_bytes=vmem_limit),
    )(*args)


def _gn_stats(x_f, w_f, plan, *, vmem_limit):
    """Layer-0 GroupNorm pass A wrapper: per-(batch, channel) mean / rstd.
    A size-2 'parallel' half-axis keeps both v7x TensorCores busy for small B."""
    B, _, C_f = x_f.shape
    kp, _, C_out = w_f.shape
    t_tile, nt, t_out, halo_blk = plan["t_tile"], plan["nt"], plan["t_out"], plan["halo"]
    n_par = 2 if (nt >= 2 and nt % 2 == 0) else 1
    nt_half = nt // n_par

    in_specs = [pl.BlockSpec((None, t_tile, C_f),
                             lambda b, h, t: (b, h * nt_half + t, 0))]
    args = [x_f]
    if kp > 1:
        hpb = t_tile // halo_blk
        in_specs.append(pl.BlockSpec(
            (None, halo_blk, C_f),
            lambda b, h, t: (b, (h * nt_half + t + 1) * hpb, 0)))
        args.append(x_f)
    in_specs.append(pl.BlockSpec((kp, C_f, C_out), lambda b, h, t: (0, 0, 0)))
    args.append(w_f)

    scratch = [pltpu.VMEM((t_tile, C_out), jnp.float32)] if kp > 1 else []

    s1, s2 = pl.pallas_call(
        functools.partial(_gn_stats_kernel, kp=kp, t_tile=t_tile,
                          nt_half=nt_half, t_out=t_out),
        out_shape=(jax.ShapeDtypeStruct((B, n_par, 1, C_out), jnp.float32),
                   jax.ShapeDtypeStruct((B, n_par, 1, C_out), jnp.float32)),
        grid=(B, n_par, nt_half),
        in_specs=in_specs,
        out_specs=[pl.BlockSpec((None, None, 1, C_out), lambda b, h, t: (b, h, 0, 0)),
                   pl.BlockSpec((None, None, 1, C_out), lambda b, h, t: (b, h, 0, 0))],
        scratch_shapes=scratch,
        compiler_params=pltpu.CompilerParams(
            dimension_semantics=("parallel", "parallel", "arbitrary"),
            vmem_limit_bytes=vmem_limit),
    )(*args)

    s1 = jnp.sum(s1, axis=1)                 # (B, 1, C_out), tiny XLA reduce
    s2 = jnp.sum(s2, axis=1)
    mean = s1 / t_out
    # TODO(synk): for very long sequences a per-tile (mean, M2) merge would be
    #             numerically more robust than E[x^2] - E[x]^2 in plain f32.
    var = s2 / t_out - mean * mean           # biased variance (Fp32GroupNorm)
    rstd = jax.lax.rsqrt(var + _GN_EPS)
    return mean, rstd


# ---------------------------------------------------------------------------
# model wrapper
# ---------------------------------------------------------------------------

def init_params(key, conv_layers):
    """Deterministic synthetic init matching the module (conv_bias=False)."""
    params = []
    in_d = 1
    for i, (dim, k, stride) in enumerate(conv_layers):
        key, wk = jax.random.split(key)
        std = math.sqrt(2.0 / (in_d * k))       # kaiming_normal_ (fan_in, gain sqrt2)
        w_torch = jax.random.normal(wk, (dim, in_d, k), jnp.float32) * std
        layer = {"w": jnp.transpose(w_torch, (2, 1, 0)),    # -> (K, C_in, C_out)
                 "stride": stride,
                 "use_gn": i == 0}              # mode='default': GroupNorm on layer 0
        if layer["use_gn"]:
            layer["gamma"] = jnp.ones((dim,), jnp.float32)
            layer["beta"] = jnp.zeros((dim,), jnp.float32)
        params.append(layer)
        in_d = dim
    return params


def conv_feature_extraction_forward(params, x_bt, *, t_tile_cap=None,
                                     layer0_tile_cap=None, vmem_limit=None):
    """x_bt: (B, T) float32 -> (B, C_last, T_last) float32 (PyTorch layout)."""
    dflt = _chip_defaults()
    t_tile_cap = t_tile_cap or dflt["t_tile_cap"]
    layer0_tile_cap = layer0_tile_cap or dflt["layer0_tile_cap"]
    vmem_limit = vmem_limit or dflt["vmem_limit"]

    B, T = x_bt.shape
    geoms = [(int(p["w"].shape[0]), int(p["stride"])) for p in params]
    plans, raw_need = _plan(geoms, T, t_tile_cap, layer0_tile_cap)

    # one cheap zero-pad of the 1-channel raw input; everything downstream is
    # produced already padded to what the next layer needs (no HBM copies).
    if raw_need > T:
        x_bt = jnp.pad(x_bt, ((0, 0), (0, raw_need - T)))
    h = x_bt.astype(jnp.float32)[:, :, None]               # (B, T_phys, 1)

    n = len(params)
    for i, (layer, plan) in enumerate(zip(params, plans)):
        S, kp = plan["stride"], plan["kp"]
        out_dtype = jnp.float32 if i == n - 1 else jnp.bfloat16
        op_dtype = jnp.float32 if i == 0 else jnp.bfloat16  # layer 0 stays f32 (Fp32GroupNorm)

        Bh, P, C = h.shape
        x_f = h.reshape(Bh, P // S, S * C)                  # free reshape (stride fold)
        w_f = _fold_weight(layer["w"], S, kp).astype(op_dtype)

        scale = shift = None
        if layer.get("use_gn", False):
            mean, rstd = _gn_stats(x_f, w_f, plan, vmem_limit=vmem_limit)
            scale = layer["gamma"][None, None, :] * rstd    # (B, 1, C_out) f32
            shift = layer["beta"][None, None, :] - mean * scale
        h = _tiled_conv(x_f, w_f, plan, out_dtype=out_dtype, vmem_limit=vmem_limit,
                        scale=scale, shift=shift)

    t_last = plans[-1]["t_out"]
    # Final trim + transpose back to PyTorch (B, C, T): a single fused XLA pass
    # over the smallest activation (the trim is unavoidable, so an in-kernel
    # transposed write would not save any HBM traffic).
    return jnp.transpose(h[:, :t_last, :], (0, 2, 1))


def _ref_forward(params, x_bt):
    """Pure-JAX f32 reference (same math, no Pallas) for correctness checking."""
    h = x_bt[:, None, :]                        # (B, 1, T)
    for layer in params:
        w = jnp.transpose(layer["w"], (2, 1, 0))            # (C_out, C_in, K)
        h = jax.lax.conv_general_dilated(h, w, (layer["stride"],), "VALID",
                                         dimension_numbers=("NCH", "OIH", "NCH"))
        if layer["use_gn"]:
            mean = jnp.mean(h, axis=2, keepdims=True)
            var = jnp.mean((h - mean) ** 2, axis=2, keepdims=True)
            h = (h - mean) * jax.lax.rsqrt(var + _GN_EPS)
            h = h * layer["gamma"][None, :, None] + layer["beta"][None, :, None]
        h = _gelu_exact(h)
    return h


if __name__ == "__main__":
    # small config consistent with ConvFeatureExtractionModel
    conv_layers = [(32, 3, 2), (32, 3, 2), (64, 2, 2)]
    B, T = 2, 320

    key = jax.random.PRNGKey(0)
    pkey, xkey = jax.random.split(key)
    params = init_params(pkey, conv_layers)
    x = jax.random.normal(xkey, (B, T), dtype=jnp.float32)

    # small tile caps so the multi-tile / halo / 2-way stats-split paths all run
    fwd = jax.jit(lambda inp: conv_feature_extraction_forward(
        params, inp, t_tile_cap=64, layer0_tile_cap=96))
    out = jax.block_until_ready(fwd(x))

    ref = _ref_forward(params, x)
    assert out.shape == ref.shape, (out.shape, ref.shape)
    # inter-layer activations / matmul operands are bf16 (intentional perf
    # tradeoff), so comparison against the pure-f32 reference is loose.
    np.testing.assert_allclose(np.asarray(out), np.asarray(ref),
                               rtol=5e-2, atol=5e-2)
    print("KERNEL_OK")
</pallas_src>

<mosaic_0001>
module attributes {stable_mosaic.version = 11 : i64} {
  func.func @_gn_stats_kernel(%arg0: i32, %arg1: i32, %arg2: i32, %arg3: memref<1x64x2xf32, #tpu.memory_space<vmem>>, %arg4: memref<1x8x2xf32, #tpu.memory_space<vmem>>, %arg5: memref<2x2x32xf32, #tpu.memory_space<vmem>>, %arg6: memref<1x1x1x32xf32, #tpu.memory_space<vmem>>, %arg7: memref<1x1x1x32xf32, #tpu.memory_space<vmem>>, %arg8: memref<64x32xf32, #tpu.memory_space<vmem>>) attributes {dimension_semantics = [#tpu.dimension_semantics<parallel>, #tpu.dimension_semantics<parallel>, #tpu.dimension_semantics<arbitrary>], iteration_bounds = array<i64: 2, 2, 2>, scalar_prefetch = 0 : i64, scratch_operands = 1 : i64, tpu.core_type = #tpu.core_type<tc>, window_params = [{transform_indices = @transform_0, window_bounds = array<i64: 1, 64, 2>}, {transform_indices = @transform_1, window_bounds = array<i64: 1, 8, 2>}, {pipeline_mode = #tpu.pipeline_mode<synchronous>, transform_indices = @transform_2, window_bounds = array<i64: 2, 2, 32>}, {transform_indices = @transform_3, window_bounds = array<i64: 1, 1, 1, 32>}, {transform_indices = @transform_4, window_bounds = array<i64: 1, 1, 1, 32>}]} {
    %c0_i32 = arith.constant 0 : i32
    %0 = arith.cmpi eq, %arg2, %c0_i32 : i32
    %1 = arith.extui %0 : i1 to i32
    %c0_i32_0 = arith.constant 0 : i32
    %2 = arith.cmpi ne, %1, %c0_i32_0 : i32
    scf.if %2 {
      %cst_49 = arith.constant 0.000000e+00 : f32
      %55 = vector.broadcast %cst_49 : f32 to vector<1x32xf32>
      %c0_50 = arith.constant 0 : index
      %c0_51 = arith.constant 0 : index
      %c0_52 = arith.constant 0 : index
      %c0_53 = arith.constant 0 : index
      %56 = vector.load %arg6[%c0_50, %c0_51, %c0_52, %c0_53] : memref<1x1x1x32xf32, #tpu.memory_space<vmem>>, vector<1x1x1x32xf32>
      %57 = vector.shape_cast %56 : vector<1x1x1x32xf32> to vector<1x32xf32>
      %58 = vector.shape_cast %55 : vector<1x32xf32> to vector<1x1x1x32xf32>
      tpu.vector_store %arg6[%c0_50, %c0_51, %c0_52, %c0_53], %58 {strides = array<i32>} : memref<1x1x1x32xf32, #tpu.memory_space<vmem>>, vector<1x1x1x32xf32>,
      %cst_54 = arith.constant 0.000000e+00 : f32
      %59 = vector.broadcast %cst_54 : f32 to vector<1x32xf32>
      %c0_55 = arith.constant 0 : index
      %c0_56 = arith.constant 0 : index
      %c0_57 = arith.constant 0 : index
      %c0_58 = arith.constant 0 : index
      %60 = vector.load %arg7[%c0_55, %c0_56, %c0_57, %c0_58] : memref<1x1x1x32xf32, #tpu.memory_space<vmem>>, vector<1x1x1x32xf32>
      %61 = vector.shape_cast %60 : vector<1x1x1x32xf32> to vector<1x32xf32>
      %62 = vector.shape_cast %59 : vector<1x32xf32> to vector<1x1x1x32xf32>
      tpu.vector_store %arg7[%c0_55, %c0_56, %c0_57, %c0_58], %62 {strides = array<i32>} : memref<1x1x1x32xf32, #tpu.memory_space<vmem>>, vector<1x1x1x32xf32>,
    } else {
    }
    %c0 = arith.constant 0 : index
    %c0_1 = arith.constant 0 : index
    %c0_2 = arith.constant 0 : index
    %3 = vector.load %arg3[%c0, %c0_1, %c0_2] : memref<1x64x2xf32, #tpu.memory_space<vmem>>, vector<1x64x2xf32>
    %4 = vector.shape_cast %3 : vector<1x64x2xf32> to vector<64x2xf32>
    %c0_3 = arith.constant 0 : index
    %c0_4 = arith.constant 0 : index
    %c0_5 = arith.constant 0 : index
    %5 = vector.load %arg5[%c0_3, %c0_4, %c0_5] : memref<2x2x32xf32, #tpu.memory_space<vmem>>, vector<1x2x32xf32>
    %6 = vector.shape_cast %5 : vector<1x2x32xf32> to vector<2x32xf32>
    %cst = arith.constant dense<0.000000e+00> : vector<64x32xf32>
    %7 = tpu.matmul %4, %6, %cst {dimension_numbers = #tpu.dot_dimension_numbers<[1], [0], [0], [1], [0, 0, 1, 1], [], []>} : vector<64x2xf32>, vector<2x32xf32>, vector<64x32xf32> -> vector<64x32xf32>
    %c0_6 = arith.constant 0 : index
    %c0_7 = arith.constant 0 : index
    %8 = vector.load %arg8[%c0_6, %c0_7] : memref<64x32xf32, #tpu.memory_space<vmem>>, vector<64x32xf32>
    tpu.vector_store %arg8[%c0_6, %c0_7], %7 {strides = array<i32>} : memref<64x32xf32, #tpu.memory_space<vmem>>, vector<64x32xf32>,
    %c0_8 = arith.constant 0 : index
    %c0_9 = arith.constant 0 : index
    %9 = vector.load %arg8[%c0_8, %c0_9] : memref<64x32xf32, #tpu.memory_space<vmem>>, vector<63x32xf32>
    %c0_10 = arith.constant 0 : index
    %c1 = arith.constant 1 : index
    %c0_11 = arith.constant 0 : index
    %10 = vector.load %arg3[%c0_10, %c1, %c0_11] : memref<1x64x2xf32, #tpu.memory_space<vmem>>, vector<1x63x2xf32>
    %11 = vector.shape_cast %10 : vector<1x63x2xf32> to vector<63x2xf32>
    %c1_12 = arith.constant 1 : index
    %c0_13 = arith.constant 0 : index
    %c0_14 = arith.constant 0 : index
    %12 = vector.load %arg5[%c1_12, %c0_13, %c0_14] : memref<2x2x32xf32, #tpu.memory_space<vmem>>, vector<1x2x32xf32>
    %13 = vector.shape_cast %12 : vector<1x2x32xf32> to vector<2x32xf32>
    %cst_15 = arith.constant dense<0.000000e+00> : vector<63x32xf32>
    %14 = tpu.matmul %11, %13, %cst_15 {dimension_numbers = #tpu.dot_dimension_numbers<[1], [0], [0], [1], [0, 0, 1, 1], [], []>} : vector<63x2xf32>, vector<2x32xf32>, vector<63x32xf32> -> vector<63x32xf32>
    %15 = arith.addf %9, %14 : vector<63x32xf32>
    %c0_16 = arith.constant 0 : index
    %c0_17 = arith.constant 0 : index
    %16 = vector.load %arg8[%c0_16, %c0_17] : memref<64x32xf32, #tpu.memory_space<vmem>>, vector<63x32xf32>
    tpu.vector_store %arg8[%c0_16, %c0_17], %15 {strides = array<i32>} : memref<64x32xf32, #tpu.memory_space<vmem>>, vector<63x32xf32>,
    %c63 = arith.constant 63 : index
    %c0_18 = arith.constant 0 : index
    %17 = vector.load %arg8[%c63, %c0_18] : memref<64x32xf32, #tpu.memory_space<vmem>>, vector<1x32xf32>
    %c0_19 = arith.constant 0 : index
    %c0_20 = arith.constant 0 : index
    %c0_21 = arith.constant 0 : index
    %18 = vector.load %arg4[%c0_19, %c0_20, %c0_21] : memref<1x8x2xf32, #tpu.memory_space<vmem>>, vector<1x1x2xf32>
    %19 = vector.shape_cast %18 : vector<1x1x2xf32> to vector<1x2xf32>
    %c1_22 = arith.constant 1 : index
    %c0_23 = arith.constant 0 : index
    %c0_24 = arith.constant 0 : index
    %20 = vector.load %arg5[%c1_22, %c0_23, %c0_24] : memref<2x2x32xf32, #tpu.memory_space<vmem>>, vector<1x2x32xf32>
    %21 = vector.shape_cast %20 : vector<1x2x32xf32> to vector<2x32xf32>
    %cst_25 = arith.constant dense<0.000000e+00> : vector<1x32xf32>
    %22 = tpu.matmul %19, %21, %cst_25 {dimension_numbers = #tpu.dot_dimension_numbers<[1], [0], [0], [1], [0, 0, 1, 1], [], []>} : vector<1x2xf32>, vector<2x32xf32>, vector<1x32xf32> -> vector<1x32xf32>
    %23 = arith.addf %17, %22 : vector<1x32xf32>
    %c63_26 = arith.constant 63 : index
    %c0_27 = arith.constant 0 : index
    %24 = vector.load %arg8[%c63_26, %c0_27] : memref<64x32xf32, #tpu.memory_space<vmem>>, vector<1x32xf32>
    tpu.vector_store %arg8[%c63_26, %c0_27], %23 {strides = array<i32>} : memref<64x32xf32, #tpu.memory_space<vmem>>, vector<1x32xf32>,
    %c0_28 = arith.constant 0 : index
    %c0_29 = arith.constant 0 : index
    %25 = vector.load %arg8[%c0_28, %c0_29] : memref<64x32xf32, #tpu.memory_space<vmem>>, vector<64x32xf32>
    %c2_i32 = arith.constant 2 : i32
    %26 = arith.muli %arg1, %c2_i32 : i32
    %27 = arith.addi %26, %arg2 : i32
    %c64_i32 = arith.constant 64 : i32
    %28 = arith.muli %27, %c64_i32 : i32
    %29 = tpu.iota {dimensions = array<i32: 0>} : vector<64x1xi32>
    %30 = vector.broadcast %28 : i32 to vector<64x1xi32>
    %31 = arith.addi %29, %30 : vector<64x1xi32>
    %c159_i32 = arith.constant 159 : i32
    %32 = vector.broadcast %c159_i32 : i32 to vector<64x1xi32>
    %33 = arith.cmpi slt, %31, %32 : vector<64x1xi32>
    %cst_30 = arith.constant 0.000000e+00 : f32
    %34 = vector.shape_cast %33 : vector<64x1xi1> to vector<64x1xi1>
    %35 = vector.broadcast %34 : vector<64x1xi1> to vector<64x32xi1>
    %36 = vector.broadcast %cst_30 : f32 to vector<64x32xf32>
    %37 = arith.select %35, %25, %36 : vector<64x32xi1>, vector<64x32xf32>
    %c0_31 = arith.constant 0 : index
    %c0_32 = arith.constant 0 : index
    %c0_33 = arith.constant 0 : index
    %c0_34 = arith.constant 0 : index
    %38 = vector.load %arg6[%c0_31, %c0_32, %c0_33, %c0_34] : memref<1x1x1x32xf32, #tpu.memory_space<vmem>>, vector<1x1x1x32xf32>
    %39 = vector.shape_cast %38 : vector<1x1x1x32xf32> to vector<1x32xf32>
    %cst_35 = arith.constant dense<0.000000e+00> : vector<32xf32>
    %40 = vector.multi_reduction <add>, %37, %cst_35 [0] : vector<64x32xf32> to vector<32xf32>
    %41 = vector.shape_cast %40 : vector<32xf32> to vector<1x32xf32>
    %42 = arith.addf %39, %41 : vector<1x32xf32>
    %c0_36 = arith.constant 0 : index
    %c0_37 = arith.constant 0 : index
    %c0_38 = arith.constant 0 : index
    %c0_39 = arith.constant 0 : index
    %43 = vector.load %arg6[%c0_36, %c0_37, %c0_38, %c0_39] : memref<1x1x1x32xf32, #tpu.memory_space<vmem>>, vector<1x1x1x32xf32>
    %44 = vector.shape_cast %43 : vector<1x1x1x32xf32> to vector<1x32xf32>
    %45 = vector.shape_cast %42 : vector<1x32xf32> to vector<1x1x1x32xf32>
    tpu.vector_store %arg6[%c0_36, %c0_37, %c0_38, %c0_39], %45 {strides = array<i32>} : memref<1x1x1x32xf32, #tpu.memory_space<vmem>>, vector<1x1x1x32xf32>,
    %c0_40 = arith.constant 0 : index
    %c0_41 = arith.constant 0 : index
    %c0_42 = arith.constant 0 : index
    %c0_43 = arith.constant 0 : index
    %46 = vector.load %arg7[%c0_40, %c0_41, %c0_42, %c0_43] : memref<1x1x1x32xf32, #tpu.memory_space<vmem>>, vector<1x1x1x32xf32>
    %47 = vector.shape_cast %46 : vector<1x1x1x32xf32> to vector<1x32xf32>
    %48 = arith.mulf %37, %37 : vector<64x32xf32>
    %cst_44 = arith.constant dense<0.000000e+00> : vector<32xf32>
    %49 = vector.multi_reduction <add>, %48, %cst_44 [0] : vector<64x32xf32> to vector<32xf32>
    %50 = vector.shape_cast %49 : vector<32xf32> to vector<1x32xf32>
    %51 = arith.addf %47, %50 : vector<1x32xf32>
    %c0_45 = arith.constant 0 : index
    %c0_46 = arith.constant 0 : index
    %c0_47 = arith.constant 0 : index
    %c0_48 = arith.constant 0 : index
    %52 = vector.load %arg7[%c0_45, %c0_46, %c0_47, %c0_48] : memref<1x1x1x32xf32, #tpu.memory_space<vmem>>, vector<1x1x1x32xf32>
    %53 = vector.shape_cast %52 : vector<1x1x1x32xf32> to vector<1x32xf32>
    %54 = vector.shape_cast %51 : vector<1x32xf32> to vector<1x1x1x32xf32>
    tpu.vector_store %arg7[%c0_45, %c0_46, %c0_47, %c0_48], %54 {strides = array<i32>} : memref<1x1x1x32xf32, #tpu.memory_space<vmem>>, vector<1x1x1x32xf32>,
    return
  }
  func.func @transform_0(%arg0: i32, %arg1: i32, %arg2: i32) -> (i32, i32, i32) {
    %c2_i32 = arith.constant 2 : i32
    %0 = arith.muli %arg1, %c2_i32 : i32
    %1 = arith.addi %0, %arg2 : i32
    %c0_i32 = arith.constant 0 : i32
    %c0_i32_0 = arith.constant 0 : i32
    return %arg0, %1, %c0_i32 : i32, i32, i32
  }
  func.func @transform_1(%arg0: i32, %arg1: i32, %arg2: i32) -> (i32, i32, i32) {
    %c2_i32 = arith.constant 2 : i32
    %0 = arith.muli %arg1, %c2_i32 : i32
    %1 = arith.addi %0, %arg2 : i32
    %c1_i32 = arith.constant 1 : i32
    %2 = arith.addi %1, %c1_i32 : i32
    %c8_i32 = arith.constant 8 : i32
    %3 = arith.muli %2, %c8_i32 : i32
    %c0_i32 = arith.constant 0 : i32
    %c0_i32_0 = arith.constant 0 : i32
    return %arg0, %3, %c0_i32 : i32, i32, i32
  }
  func.func @transform_2(%arg0: i32, %arg1: i32, %arg2: i32) -> (i32, i32, i32) {
    %c0_i32 = arith.constant 0 : i32
    %c0_i32_0 = arith.constant 0 : i32
    %c0_i32_1 = arith.constant 0 : i32
    %c0_i32_2 = arith.constant 0 : i32
    return %c0_i32, %c0_i32_0, %c0_i32_1 : i32, i32, i32
  }
  func.func @transform_3(%arg0: i32, %arg1: i32, %arg2: i32) -> (i32, i32, i32, i32) {
    %c0_i32 = arith.constant 0 : i32
    %c0_i32_0 = arith.constant 0 : i32
    %c0_i32_1 = arith.constant 0 : i32
    return %arg0, %arg1, %c0_i32, %c0_i32_0 : i32, i32, i32, i32
  }
  func.func @transform_4(%arg0: i32, %arg1: i32, %arg2: i32) -> (i32, i32, i32, i32) {
    %c0_i32 = arith.constant 0 : i32
    %c0_i32_0 = arith.constant 0 : i32
    %c0_i32_1 = arith.constant 0 : i32
    return %arg0, %arg1, %c0_i32, %c0_i32_0 : i32, i32, i32, i32
  }
}

module attributes {stable_mosaic.version = 11 : i64} {
  func.func @_conv_tile_kernel(%arg0: i32, %arg1: i32, %arg2: memref<1x64x2xf32, #tpu.memory_space<vmem>>, %arg3: memref<1x8x2xf32, #tpu.memory_space<vmem>>, %arg4: memref<2x2x32xf32, #tpu.memory_space<vmem>>, %arg5: memref<1x1x32xf32, #tpu.memory_space<vmem>>, %arg6: memref<1x1x32xf32, #tpu.memory_space<vmem>>, %arg7: memref<1x64x32xbf16, #tpu.memory_space<vmem>>, %arg8: memref<64x32xf32, #tpu.memory_space<vmem>>) attributes {dimension_semantics = [#tpu.dimension_semantics<parallel>, #tpu.dimension_semantics<parallel>], iteration_bounds = array<i64: 2, 4>, scalar_prefetch = 0 : i64, scratch_operands = 1 : i64, tpu.core_type = #tpu.core_type<tc>, window_params = [{transform_indices = @transform_0, window_bounds = array<i64: 1, 64, 2>}, {transform_indices = @transform_1, window_bounds = array<i64: 1, 8, 2>}, {pipeline_mode = #tpu.pipeline_mode<synchronous>, transform_indices = @transform_2, window_bounds = array<i64: 2, 2, 32>}, {transform_indices = @transform_3, window_bounds = array<i64: 1, 1, 32>}, {transform_indices = @transform_4, window_bounds = array<i64: 1, 1, 32>}, {transform_indices = @transform_5, window_bounds = array<i64: 1, 64, 32>}]} {
    %c0 = arith.constant 0 : index
    %c0_0 = arith.constant 0 : index
    %c0_1 = arith.constant 0 : index
    %0 = vector.load %arg2[%c0, %c0_0, %c0_1] : memref<1x64x2xf32, #tpu.memory_space<vmem>>, vector<1x64x2xf32>
    %1 = vector.shape_cast %0 : vector<1x64x2xf32> to vector<64x2xf32>
    %c0_2 = arith.constant 0 : index
    %c0_3 = arith.constant 0 : index
    %c0_4 = arith.constant 0 : index
    %2 = vector.load %arg4[%c0_2, %c0_3, %c0_4] : memref<2x2x32xf32, #tpu.memory_space<vmem>>, vector<1x2x32xf32>
    %3 = vector.shape_cast %2 : vector<1x2x32xf32> to vector<2x32xf32>
    %cst = arith.constant dense<0.000000e+00> : vector<64x32xf32>
    %4 = tpu.matmul %1, %3, %cst {dimension_numbers = #tpu.dot_dimension_numbers<[1], [0], [0], [1], [0, 0, 1, 1], [], []>} : vector<64x2xf32>, vector<2x32xf32>, vector<64x32xf32> -> vector<64x32xf32>
    %c0_5 = arith.constant 0 : index
    %c0_6 = arith.constant 0 : index
    %5 = vector.load %arg8[%c0_5, %c0_6] : memref<64x32xf32, #tpu.memory_space<vmem>>, vector<64x32xf32>
    tpu.vector_store %arg8[%c0_5, %c0_6], %4 {strides = array<i32>} : memref<64x32xf32, #tpu.memory_space<vmem>>, vector<64x32xf32>,
    %c0_7 = arith.constant 0 : index
    %c0_8 = arith.constant 0 : index
    %6 = vector.load %arg8[%c0_7, %c0_8] : memref<64x32xf32, #tpu.memory_space<vmem>>, vector<63x32xf32>
    %c0_9 = arith.constant 0 : index
    %c1 = arith.constant 1 : index
    %c0_10 = arith.constant 0 : index
    %7 = vector.load %arg2[%c0_9, %c1, %c0_10] : memref<1x64x2xf32, #tpu.memory_space<vmem>>, vector<1x63x2xf32>
    %8 = vector.shape_cast %7 : vector<1x63x2xf32> to vector<63x2xf32>
    %c1_11 = arith.constant 1 : index
    %c0_12 = arith.constant 0 : index
    %c0_13 = arith.constant 0 : index
    %9 = vector.load %arg4[%c1_11, %c0_12, %c0_13] : memref<2x2x32xf32, #tpu.memory_space<vmem>>, vector<1x2x32xf32>
    %10 = vector.shape_cast %9 : vector<1x2x32xf32> to vector<2x32xf32>
    %cst_14 = arith.constant dense<0.000000e+00> : vector<63x32xf32>
    %11 = tpu.matmul %8, %10, %cst_14 {dimension_numbers = #tpu.dot_dimension_numbers<[1], [0], [0], [1], [0, 0, 1, 1], [], []>} : vector<63x2xf32>, vector<2x32xf32>, vector<63x32xf32> -> vector<63x32xf32>
    %12 = arith.addf %6, %11 : vector<63x32xf32>
    %c0_15 = arith.constant 0 : index
    %c0_16 = arith.constant 0 : index
    %13 = vector.load %arg8[%c0_15, %c0_16] : memref<64x32xf32, #tpu.memory_space<vmem>>, vector<63x32xf32>
    tpu.vector_store %arg8[%c0_15, %c0_16], %12 {strides = array<i32>} : memref<64x32xf32, #tpu.memory_space<vmem>>, vector<63x32xf32>,
    %c63 = arith.constant 63 : index
    %c0_17 = arith.constant 0 : index
    %14 = vector.load %arg8[%c63, %c0_17] : memref<64x32xf32, #tpu.memory_space<vmem>>, vector<1x32xf32>
    %c0_18 = arith.constant 0 : index
    %c0_19 = arith.constant 0 : index
    %c0_20 = arith.constant 0 : index
    %15 = vector.load %arg3[%c0_18, %c0_19, %c0_20] : memref<1x8x2xf32, #tpu.memory_space<vmem>>, vector<1x1x2xf32>
    %16 = vector.shape_cast %15 : vector<1x1x2xf32> to vector<1x2xf32>
    %c1_21 = arith.constant 1 : index
    %c0_22 = arith.constant 0 : index
    %c0_23 = arith.constant 0 : index
    %17 = vector.load %arg4[%c1_21, %c0_22, %c0_23] : memref<2x2x32xf32, #tpu.memory_space<vmem>>, vector<1x2x32xf32>
    %18 = vector.shape_cast %17 : vector<1x2x32xf32> to vector<2x32xf32>
    %cst_24 = arith.constant dense<0.000000e+00> : vector<1x32xf32>
    %19 = tpu.matmul %16, %18, %cst_24 {dimension_numbers = #tpu.dot_dimension_numbers<[1], [0], [0], [1], [0, 0, 1, 1], [], []>} : vector<1x2xf32>, vector<2x32xf32>, vector<1x32xf32> -> vector<1x32xf32>
    %20 = arith.addf %14, %19 : vector<1x32xf32>
    %c63_25 = arith.constant 63 : index
    %c0_26 = arith.constant 0 : index
    %21 = vector.load %arg8[%c63_25, %c0_26] : memref<64x32xf32, #tpu.memory_space<vmem>>, vector<1x32xf32>
    tpu.vector_store %arg8[%c63_25, %c0_26], %20 {strides = array<i32>} : memref<64x32xf32, #tpu.memory_space<vmem>>, vector<1x32xf32>,
    %c0_27 = arith.constant 0 : index
    %c0_28 = arith.constant 0 : index
    %22 = vector.load %arg8[%c0_27, %c0_28] : memref<64x32xf32, #tpu.memory_space<vmem>>, vector<64x32xf32>
    %c0_29 = arith.constant 0 : index
    %c0_30 = arith.constant 0 : index
    %c0_31 = arith.constant 0 : index
    %23 = vector.load %arg5[%c0_29, %c0_30, %c0_31] : memref<1x1x32xf32, #tpu.memory_space<vmem>>, vector<1x1x32xf32>
    %24 = vector.shape_cast %23 : vector<1x1x32xf32> to vector<1x32xf32>
    %25 = vector.broadcast %24 : vector<1x32xf32> to vector<64x32xf32>
    %26 = arith.mulf %22, %25 : vector<64x32xf32>
    %c0_32 = arith.constant 0 : index
    %c0_33 = arith.constant 0 : index
    %c0_34 = arith.constant 0 : index
    %27 = vector.load %arg6[%c0_32, %c0_33, %c0_34] : memref<1x1x32xf32, #tpu.memory_space<vmem>>, vector<1x1x32xf32>
    %28 = vector.shape_cast %27 : vector<1x1x32xf32> to vector<1x32xf32>
    %29 = vector.broadcast %28 : vector<1x32xf32> to vector<64x32xf32>
    %30 = arith.addf %26, %29 : vector<64x32xf32>
    %cst_35 = arith.constant 5.000000e-01 : f32
    %31 = vector.broadcast %cst_35 : f32 to vector<64x32xf32>
    %32 = arith.mulf %31, %30 : vector<64x32xf32>
    %cst_36 = arith.constant 0.707106769 : f32
    %33 = vector.broadcast %cst_36 : f32 to vector<64x32xf32>
    %34 = arith.mulf %30, %33 : vector<64x32xf32>
    %35 = math.erf %34 : vector<64x32xf32>
    %cst_37 = arith.constant 1.000000e+00 : f32
    %36 = vector.broadcast %cst_37 : f32 to vector<64x32xf32>
    %37 = arith.addf %36, %35 : vector<64x32xf32>
    %38 = arith.mulf %32, %37 : vector<64x32xf32>
    %39 = arith.truncf %38 : vector<64x32xf32> to vector<64x32xbf16>
    %c0_38 = arith.constant 0 : index
    %c0_39 = arith.constant 0 : index
    %c0_40 = arith.constant 0 : index
    %40 = vector.load %arg7[%c0_38, %c0_39, %c0_40] : memref<1x64x32xbf16, #tpu.memory_space<vmem>>, vector<1x64x32xbf16>
    %41 = vector.shape_cast %40 : vector<1x64x32xbf16> to vector<64x32xbf16>
    %42 = vector.shape_cast %39 : vector<64x32xbf16> to vector<1x64x32xbf16>
    tpu.vector_store %arg7[%c0_38, %c0_39, %c0_40], %42 {strides = array<i32>} : memref<1x64x32xbf16, #tpu.memory_space<vmem>>, vector<1x64x32xbf16>,
    return
  }
  func.func @transform_0(%arg0: i32, %arg1: i32) -> (i32, i32, i32) {
    %c0_i32 = arith.constant 0 : i32
    %c0_i32_0 = arith.constant 0 : i32
    return %arg0, %arg1, %c0_i32 : i32, i32, i32
  }
  func.func @transform_1(%arg0: i32, %arg1: i32) -> (i32, i32, i32) {
    %c1_i32 = arith.constant 1 : i32
    %0 = arith.addi %arg1, %c1_i32 : i32
    %c8_i32 = arith.constant 8 : i32
    %1 = arith.muli %0, %c8_i32 : i32
    %c0_i32 = arith.constant 0 : i32
    %c0_i32_0 = arith.constant 0 : i32
    return %arg0, %1, %c0_i32 : i32, i32, i32
  }
  func.func @transform_2(%arg0: i32, %arg1: i32) -> (i32, i32, i32) {
    %c0_i32 = arith.constant 0 : i32
    %c0_i32_0 = arith.constant 0 : i32
    %c0_i32_1 = arith.constant 0 : i32
    %c0_i32_2 = arith.constant 0 : i32
    return %c0_i32, %c0_i32_0, %c0_i32_1 : i32, i32, i32
  }
  func.func @transform_3(%arg0: i32, %arg1: i32) -> (i32, i32, i32) {
    %c0_i32 = arith.constant 0 : i32
    %c0_i32_0 = arith.constant 0 : i32
    %c0_i32_1 = arith.constant 0 : i32
    return %arg0, %c0_i32, %c0_i32_0 : i32, i32, i32
  }
  func.func @transform_4(%arg0: i32, %arg1: i32) -> (i32, i32, i32) {
    %c0_i32 = arith.constant 0 : i32
    %c0_i32_0 = arith.constant 0 : i32
    %c0_i32_1 = arith.constant 0 : i32
    return %arg0, %c0_i32, %c0_i32_0 : i32, i32, i32
  }
  func.func @transform_5(%arg0: i32, %arg1: i32) -> (i32, i32, i32) {
    %c0_i32 = arith.constant 0 : i32
    %c0_i32_0 = arith.constant 0 : i32
    return %arg0, %arg1, %c0_i32 : i32, i32, i32
  }
}

module attributes {stable_mosaic.version = 11 : i64} {
  func.func @_conv_tile_kernel(%arg0: i32, %arg1: i32, %arg2: memref<1x48x64xbf16, #tpu.memory_space<vmem>>, %arg3: memref<1x8x64xbf16, #tpu.memory_space<vmem>>, %arg4: memref<2x64x32xbf16, #tpu.memory_space<vmem>>, %arg5: memref<1x48x32xbf16, #tpu.memory_space<vmem>>, %arg6: memref<48x32xf32, #tpu.memory_space<vmem>>) attributes {dimension_semantics = [#tpu.dimension_semantics<parallel>, #tpu.dimension_semantics<parallel>], iteration_bounds = array<i64: 2, 2>, scalar_prefetch = 0 : i64, scratch_operands = 1 : i64, tpu.core_type = #tpu.core_type<tc>, window_params = [{transform_indices = @transform_0, window_bounds = array<i64: 1, 48, 64>}, {transform_indices = @transform_1, window_bounds = array<i64: 1, 8, 64>}, {pipeline_mode = #tpu.pipeline_mode<synchronous>, transform_indices = @transform_2, window_bounds = array<i64: 2, 64, 32>}, {transform_indices = @transform_3, window_bounds = array<i64: 1, 48, 32>}]} {
    %c0 = arith.constant 0 : index
    %c0_0 = arith.constant 0 : index
    %c0_1 = arith.constant 0 : index
    %0 = vector.load %arg2[%c0, %c0_0, %c0_1] : memref<1x48x64xbf16, #tpu.memory_space<vmem>>, vector<1x48x64xbf16>
    %1 = vector.shape_cast %0 : vector<1x48x64xbf16> to vector<48x64xbf16>
    %c0_2 = arith.constant 0 : index
    %c0_3 = arith.constant 0 : index
    %c0_4 = arith.constant 0 : index
    %2 = vector.load %arg4[%c0_2, %c0_3, %c0_4] : memref<2x64x32xbf16, #tpu.memory_space<vmem>>, vector<1x64x32xbf16>
    %3 = vector.shape_cast %2 : vector<1x64x32xbf16> to vector<64x32xbf16>
    %cst = arith.constant dense<0.000000e+00> : vector<48x32xf32>
    %4 = tpu.matmul %1, %3, %cst {dimension_numbers = #tpu.dot_dimension_numbers<[1], [0], [0], [1], [0, 0, 1, 1], [], []>} : vector<48x64xbf16>, vector<64x32xbf16>, vector<48x32xf32> -> vector<48x32xf32>
    %c0_5 = arith.constant 0 : index
    %c0_6 = arith.constant 0 : index
    %5 = vector.load %arg6[%c0_5, %c0_6] : memref<48x32xf32, #tpu.memory_space<vmem>>, vector<48x32xf32>
    tpu.vector_store %arg6[%c0_5, %c0_6], %4 {strides = array<i32>} : memref<48x32xf32, #tpu.memory_space<vmem>>, vector<48x32xf32>,
    %c0_7 = arith.constant 0 : index
    %c0_8 = arith.constant 0 : index
    %6 = vector.load %arg6[%c0_7, %c0_8] : memref<48x32xf32, #tpu.memory_space<vmem>>, vector<47x32xf32>
    %c0_9 = arith.constant 0 : index
    %c1 = arith.constant 1 : index
    %c0_10 = arith.constant 0 : index
    %7 = vector.load %arg2[%c0_9, %c1, %c0_10] : memref<1x48x64xbf16, #tpu.memory_space<vmem>>, vector<1x47x64xbf16>
    %8 = vector.shape_cast %7 : vector<1x47x64xbf16> to vector<47x64xbf16>
    %c1_11 = arith.constant 1 : index
    %c0_12 = arith.constant 0 : index
    %c0_13 = arith.constant 0 : index
    %9 = vector.load %arg4[%c1_11, %c0_12, %c0_13] : memref<2x64x32xbf16, #tpu.memory_space<vmem>>, vector<1x64x32xbf16>
    %10 = vector.shape_cast %9 : vector<1x64x32xbf16> to vector<64x32xbf16>
    %cst_14 = arith.constant dense<0.000000e+00> : vector<47x32xf32>
    %11 = tpu.matmul %8, %10, %cst_14 {dimension_numbers = #tpu.dot_dimension_numbers<[1], [0], [0], [1], [0, 0, 1, 1], [], []>} : vector<47x64xbf16>, vector<64x32xbf16>, vector<47x32xf32> -> vector<47x32xf32>
    %12 = arith.addf %6, %11 : vector<47x32xf32>
    %c0_15 = arith.constant 0 : index
    %c0_16 = arith.constant 0 : index
    %13 = vector.load %arg6[%c0_15, %c0_16] : memref<48x32xf32, #tpu.memory_space<vmem>>, vector<47x32xf32>
    tpu.vector_store %arg6[%c0_15, %c0_16], %12 {strides = array<i32>} : memref<48x32xf32, #tpu.memory_space<vmem>>, vector<47x32xf32>,
    %c47 = arith.constant 47 : index
    %c0_17 = arith.constant 0 : index
    %14 = vector.load %arg6[%c47, %c0_17] : memref<48x32xf32, #tpu.memory_space<vmem>>, vector<1x32xf32>
    %c0_18 = arith.constant 0 : index
    %c0_19 = arith.constant 0 : index
    %c0_20 = arith.constant 0 : index
    %15 = vector.load %arg3[%c0_18, %c0_19, %c0_20] : memref<1x8x64xbf16, #tpu.memory_space<vmem>>, vector<1x1x64xbf16>
    %16 = vector.shape_cast %15 : vector<1x1x64xbf16> to vector<1x64xbf16>
    %c1_21 = arith.constant 1 : index
    %c0_22 = arith.constant 0 : index
    %c0_23 = arith.constant 0 : index
    %17 = vector.load %arg4[%c1_21, %c0_22, %c0_23] : memref<2x64x32xbf16, #tpu.memory_space<vmem>>, vector<1x64x32xbf16>
    %18 = vector.shape_cast %17 : vector<1x64x32xbf16> to vector<64x32xbf16>
    %cst_24 = arith.constant dense<0.000000e+00> : vector<1x32xf32>
    %19 = tpu.matmul %16, %18, %cst_24 {dimension_numbers = #tpu.dot_dimension_numbers<[1], [0], [0], [1], [0, 0, 1, 1], [], []>} : vector<1x64xbf16>, vector<64x32xbf16>, vector<1x32xf32> -> vector<1x32xf32>
    %20 = arith.addf %14, %19 : vector<1x32xf32>
    %c47_25 = arith.constant 47 : index
    %c0_26 = arith.constant 0 : index
    %21 = vector.load %arg6[%c47_25, %c0_26] : memref<48x32xf32, #tpu.memory_space<vmem>>, vector<1x32xf32>
    tpu.vector_store %arg6[%c47_25, %c0_26], %20 {strides = array<i32>} : memref<48x32xf32, #tpu.memory_space<vmem>>, vector<1x32xf32>,
    %c0_27 = arith.constant 0 : index
    %c0_28 = arith.constant 0 : index
    %22 = vector.load %arg6[%c0_27, %c0_28] : memref<48x32xf32, #tpu.memory_space<vmem>>, vector<48x32xf32>
    %cst_29 = arith.constant 5.000000e-01 : f32
    %23 = vector.broadcast %cst_29 : f32 to vector<48x32xf32>
    %24 = arith.mulf %23, %22 : vector<48x32xf32>
    %cst_30 = arith.constant 0.707106769 : f32
    %25 = vector.broadcast %cst_30 : f32 to vector<48x32xf32>
    %26 = arith.mulf %22, %25 : vector<48x32xf32>
    %27 = math.erf %26 : vector<48x32xf32>
    %cst_31 = arith.constant 1.000000e+00 : f32
    %28 = vector.broadcast %cst_31 : f32 to vector<48x32xf32>
    %29 = arith.addf %28, %27 : vector<48x32xf32>
    %30 = arith.mulf %24, %29 : vector<48x32xf32>
    %31 = arith.truncf %30 : vector<48x32xf32> to vector<48x32xbf16>
    %c0_32 = arith.constant 0 : index
    %c0_33 = arith.constant 0 : index
    %c0_34 = arith.constant 0 : index
    %32 = vector.load %arg5[%c0_32, %c0_33, %c0_34] : memref<1x48x32xbf16, #tpu.memory_space<vmem>>, vector<1x48x32xbf16>
    %33 = vector.shape_cast %32 : vector<1x48x32xbf16> to vector<48x32xbf16>
    %34 = vector.shape_cast %31 : vector<48x32xbf16> to vector<1x48x32xbf16>
    tpu.vector_store %arg5[%c0_32, %c0_33, %c0_34], %34 {strides = array<i32>} : memref<1x48x32xbf16, #tpu.memory_space<vmem>>, vector<1x48x32xbf16>,
    return
  }
  func.func @transform_0(%arg0: i32, %arg1: i32) -> (i32, i32, i32) {
    %c0_i32 = arith.constant 0 : i32
    %c0_i32_0 = arith.constant 0 : i32
    return %arg0, %arg1, %c0_i32 : i32, i32, i32
  }
  func.func @transform_1(%arg0: i32, %arg1: i32) -> (i32, i32, i32) {
    %c1_i32 = arith.constant 1 : i32
    %0 = arith.addi %arg1, %c1_i32 : i32
    %c6_i32 = arith.constant 6 : i32
    %1 = arith.muli %0, %c6_i32 : i32
    %c0_i32 = arith.constant 0 : i32
    %c0_i32_0 = arith.constant 0 : i32
    return %arg0, %1, %c0_i32 : i32, i32, i32
  }
  func.func @transform_2(%arg0: i32, %arg1: i32) -> (i32, i32, i32) {
    %c0_i32 = arith.constant 0 : i32
    %c0_i32_0 = arith.constant 0 : i32
    %c0_i32_1 = arith.constant 0 : i32
    %c0_i32_2 = arith.constant 0 : i32
    return %c0_i32, %c0_i32_0, %c0_i32_1 : i32, i32, i32
  }
  func.func @transform_3(%arg0: i32, %arg1: i32) -> (i32, i32, i32) {
    %c0_i32 = arith.constant 0 : i32
    %c0_i32_0 = arith.constant 0 : i32
    return %arg0, %arg1, %c0_i32 : i32, i32, i32
  }
}

module attributes {stable_mosaic.version = 11 : i64} {
  func.func @_conv_tile_kernel(%arg0: i32, %arg1: i32, %arg2: memref<1x48x64xbf16, #tpu.memory_space<vmem>>, %arg3: memref<1x64x64xbf16, #tpu.memory_space<vmem>>, %arg4: memref<1x48x64xf32, #tpu.memory_space<vmem>>) attributes {dimension_semantics = [#tpu.dimension_semantics<parallel>, #tpu.dimension_semantics<parallel>], iteration_bounds = array<i64: 2, 1>, scalar_prefetch = 0 : i64, scratch_operands = 0 : i64, tpu.core_type = #tpu.core_type<tc>, window_params = [{transform_indices = @transform_0, window_bounds = array<i64: 1, 48, 64>}, {pipeline_mode = #tpu.pipeline_mode<synchronous>, transform_indices = @transform_1, window_bounds = array<i64: 1, 64, 64>}, {transform_indices = @transform_2, window_bounds = array<i64: 1, 48, 64>}]} {
    %c0 = arith.constant 0 : index
    %c0_0 = arith.constant 0 : index
    %c0_1 = arith.constant 0 : index
    %0 = vector.load %arg2[%c0, %c0_0, %c0_1] : memref<1x48x64xbf16, #tpu.memory_space<vmem>>, vector<1x48x64xbf16>
    %1 = vector.shape_cast %0 : vector<1x48x64xbf16> to vector<48x64xbf16>
    %c0_2 = arith.constant 0 : index
    %c0_3 = arith.constant 0 : index
    %c0_4 = arith.constant 0 : index
    %2 = vector.load %arg3[%c0_2, %c0_3, %c0_4] : memref<1x64x64xbf16, #tpu.memory_space<vmem>>, vector<1x64x64xbf16>
    %3 = vector.shape_cast %2 : vector<1x64x64xbf16> to vector<64x64xbf16>
    %cst = arith.constant dense<0.000000e+00> : vector<48x64xf32>
    %4 = tpu.matmul %1, %3, %cst {dimension_numbers = #tpu.dot_dimension_numbers<[1], [0], [0], [1], [0, 0, 1, 1], [], []>} : vector<48x64xbf16>, vector<64x64xbf16>, vector<48x64xf32> -> vector<48x64xf32>
    %cst_5 = arith.constant 5.000000e-01 : f32
    %5 = vector.broadcast %cst_5 : f32 to vector<48x64xf32>
    %6 = arith.mulf %5, %4 : vector<48x64xf32>
    %cst_6 = arith.constant 0.707106769 : f32
    %7 = vector.broadcast %cst_6 : f32 to vector<48x64xf32>
    %8 = arith.mulf %4, %7 : vector<48x64xf32>
    %9 = math.erf %8 : vector<48x64xf32>
    %cst_7 = arith.constant 1.000000e+00 : f32
    %10 = vector.broadcast %cst_7 : f32 to vector<48x64xf32>
    %11 = arith.addf %10, %9 : vector<48x64xf32>
    %12 = arith.mulf %6, %11 : vector<48x64xf32>
    %c0_8 = arith.constant 0 : index
    %c0_9 = arith.constant 0 : index
    %c0_10 = arith.constant 0 : index
    %13 = vector.load %arg4[%c0_8, %c0_9, %c0_10] : memref<1x48x64xf32, #tpu.memory_space<vmem>>, vector<1x48x64xf32>
    %14 = vector.shape_cast %13 : vector<1x48x64xf32> to vector<48x64xf32>
    %15 = vector.shape_cast %12 : vector<48x64xf32> to vector<1x48x64xf32>
    tpu.vector_store %arg4[%c0_8, %c0_9, %c0_10], %15 {strides = array<i32>} : memref<1x48x64xf32, #tpu.memory_space<vmem>>, vector<1x48x64xf32>,
    return
  }
  func.func @transform_0(%arg0: i32, %arg1: i32) -> (i32, i32, i32) {
    %c0_i32 = arith.constant 0 : i32
    %c0_i32_0 = arith.constant 0 : i32
    return %arg0, %arg1, %c0_i32 : i32, i32, i32
  }
  func.func @transform_1(%arg0: i32, %arg1: i32) -> (i32, i32, i32) {
    %c0_i32 = arith.constant 0 : i32
    %c0_i32_0 = arith.constant 0 : i32
    %c0_i32_1 = arith.constant 0 : i32
    %c0_i32_2 = arith.constant 0 : i32
    return %c0_i32, %c0_i32_0, %c0_i32_1 : i32, i32, i32
  }
  func.func @transform_2(%arg0: i32, %arg1: i32) -> (i32, i32, i32) {
    %c0_i32 = arith.constant 0 : i32
    %c0_i32_0 = arith.constant 0 : i32
    return %arg0, %arg1, %c0_i32 : i32, i32, i32
  }
}

</mosaic_0001>

<bundles_post_ra>
// kernel: _lambda_.4
= control target key start
LH: loop header
LB: loop body
LE: loop exit
PB: predicated region body
PF: predicated region fallthrough
CT: control target
= control target key end

     0   :  { %s1270_s15 = smov 0   ;;  %s1272_s16 = smov 0   ;;  %s1479_s0 = inlined_call_operand.vmem [shape: f32[2,264,2], index: 0, kind: input, shape index: {}, may-alias: {0,1}]   ;;  %s1480_s1 = inlined_call_operand.vmem [shape: f32[2,264,2], index: 1, kind: input, shape index: {}, may-alias: {0,1}]   ;;  %s1481_s2 = inlined_call_operand.vmem [shape: f32[2,2,32], index: 2, kind: input, shape index: {}]   ;;  %s1482_s3 = inlined_call_operand.vmem [shape: f32[2,2,1,32], index: 3, kind: output, shape index: {0}]   ;;  %s1483_s4 = inlined_call_operand.vmem [shape: f32[2,2,1,32], index: 4, kind: output, shape index: {1}]  }
   0x1   :  { %s1274_s17 = smov 0   ;;  %s1276_s18 = smov 0  }
   0x2   :  { %s1278_s19 = smov 0   ;;  %s1280_s20 = smov 0  }
   0x3   :  { %s1282_s21 = smov 0  }
   0x4 LB: > { %s27_s22 = sadd.s32 1, %s1228_s18  ;;  %s30_s23 = sadd.s32 1, %s1232_s19  ;;  %s1240_s21 = sphi %s1282_s21, %s15_s21   ;;  %s1236_s20 = sphi %s1280_s20, %s1493_s20   ;;  %s1232_s19 = sphi %s1278_s19, %s1492_s19   ;;  %s1228_s18 = sphi %s1276_s18, %s1491_s18   ;;  %s1224_s17 = sphi %s1274_s17, %s1490_s17   ;;  %s1220_s16 = sphi %s1272_s16, %s1489_s16   ;;  %s1216_s15 = sphi %s1270_s15, %s1488_s15  }
   0x5   : > { %p28_p0 = scmp.ge.s32.totalorder %s27_s22, 2  ;;  %p1031_p1 = scmp.ge.s32.totalorder %s1240_s21, 1 }
   0x6   : > { %p242_p2 = scmp.lt.s32.totalorder %s1240_s21, 9  ;;  %s34_s24 = sadd.s32 1, %s1236_s20 }
   0x7   : > { %s1495_s22 = smov (%p28_p0, %s27_s22), 0  ;;  %s1497_s23 = smov (!%p28_p0, %s30_s23), %s1232_s19 }
   0x8   : > { %p243_p3 = pnand %p1031_p1, %p242_p2  ;;  %p32_p4 = scmp.ge.s32.totalorder %s1497_s23, 2 }
   0x9   : > { %s1032_s25 = sshll.u32 (!%p243_p3), %s1220_s16, 1  ;;  %p306_p6 = scmp.lt.s32.totalorder (!%p243_p3), %s1224_s17, 1 }
   0xa   : > { %s1499_s23 = smov (%p32_p4, %s1497_s23), 0  ;;  %s1501_s24 = smov (!%p32_p4, %s34_s24), %s1236_s20 }
   0xb   : > { %1484 = sst [smem:[#allocation3_spill]] %s1499_s23  ;;  %p36_p5 = scmp.ge.s32.totalorder %s1501_s24, 2 }
   0xc   : > { %246 = sbr.rel (%p243_p3) target bundleno = 281 (0x119), region = 32  ;;  %s1318_s26 = sadd.s32 (!%p243_p3), %s1216_s15, %s1032_s25 }
   0xd   : > { %s1503_s24 = smov (%p36_p5, %s1501_s24), 0  ;;  %s1033_s27 = sshll.u32 (!%p243_p3), %s1318_s26, 3 }
   0xe   : > { %1485 = sst [smem:[#allocation4_spill]] %s1503_s24  ;;  %p308_p7 = scmp.lt.s32.totalorder (!%p243_p3), %s1033_s27, 32 }
   0xf   : > { %s1072_s28 = sadd.s32 (!%p243_p3), 8, %s1033_s27  ;;  %p339_p9 = scmp.lt.s32.totalorder (!%p243_p3), %s1220_s16, 1 }
  0x10   : > { %p327_p8 = scmp.lt.s32.totalorder (!%p243_p3), %s1072_s28, 32  ;;  %p1040_p10 = scmp.ne.s32.totalorder (!%p243_p3), %s1216_s15, 0 }
  0x11   : > { %s1505_s17 = smov (!%p306_p6, %s1224_s17), 1  ;;  %s1507_s27 = smov (!%p308_p7, %s1033_s27), 32 }
  0x12   : > { %s1126_s29 = smul.u32 33, %s1505_s17  ;;  %s1509_s28 = smov (!%p327_p8, %s1072_s28), 32 }
  0x13   : > { %s1038_s14 = sshll.u32 %s1505_s17, 1  ;;  %s1511_s16 = smov (!%p339_p9, %s1220_s16), 1 }
  0x14   : > { %s311_s30 = sadd.s32 %s1126_s29, %s1507_s27  ;;  %s330_s6 = sadd.s32 %s1126_s29, %s1509_s28 }
  0x15   : > { %s1034_s5 = sshll.u32 %s311_s30, 3  ;;  %s1037_s10 = sshll.u32 %s330_s6, 3 }
  0x16   : > { %s1325_s9 = scalar_lea.vmem %s1479_s0, %s1034_s5  ;;  %s1330_s13 = scalar_lea.vmem %s1480_s1, %s1037_s10 }
  0x17   : > { %s342_s25 = sadd.s32 %s1038_s14, %s1511_s16  ;;  %354 = sbr.rel (%p1040_p10) target bundleno = 30 (0x1e), region = 36 }
  0x18   : > { %s1336_s27 = scalar_lea.vmem %s1482_s3, %s342_s25  ;;  %s1341_s30 = scalar_lea.vmem %s1483_s4, %s342_s25 }
  0x1c   : > { %vm355_vm0 = vcmask 253952   ;;  %v1242_v0 = vmov 0.0  }
  0x1d   : > { %356 = vst.msk [vmem:[%s1336_s27] sm:$0x1] %vm355_vm0, %v1242_v0  ;;  %357 = vst.msk [vmem:[%s1341_s30] sm:$0x1] %vm355_vm0, %v1242_v0 }
  0x1e PF: > { %v366_v1 = vld [vmem:[%s1481_s2] sm:$0x3]  ;;  %vm392_vm1 = vcmask 1041408   ;;  %vm367_vm2 = vcmask 15360   ;;  %v359_v3 = vld [vmem:[%s1325_s9 + $0x8] sm:$0xff]  ;;  %v360_v4 = vld [vmem:[%s1325_s9 + $0x10] sm:$0xff]  ;;  %v770_v23 = vlaneseq }
  0x1f   : > { %v358_v2 = vld [vmem:[%s1325_s9] sm:$0xff]  ;;  %1093 = vmatprep.subr.msk.mxu0 %vm392_vm1, %v366_v1  ;;  %v519_v7 = vld [vmem:[%s1325_s9 + $0x9] sm:$0xff]  ;;  %v520_v9 = vld [vmem:[%s1325_s9 + $0x11] sm:$0xff]  ;;  %v1243_v12 = vmov 0.0   ;;  %vm1244_vm3 = vmmov 0   ;;  %vm501_vm4 = vcmask 261120  }
  0x20   : > { %1095 = vmatprep.mubr.msk.f32.mxu0 %vm367_vm2, %v358_v2  ;;  %v1050_v5 = vld [vmem:[%s1481_s2 + $0x2] sm:$0x3]  ;;  %1094 = vmatpush3.msk.msra.mxu0 %vm392_vm1, %v366_v1  ;;  %v361_v10 = vld [vmem:[%s1325_s9 + $0x18] sm:$0xff]  ;;  %v363_v15 = vld [vmem:[%s1325_s9 + $0x28] sm:$0xff]  ;;  %v1396_v28 = vshrl.u32 %v770_v23, 7  ;;  %s1064_s6 = sshll.u32 %s1318_s26, 6 }
  0x21   : > { %1107 = vmatprep.subr.msk.mxu1 %vm392_vm1, %v1050_v5  ;;  %v518_v6 = vld [vmem:[%s1325_s9 + $0x1] sm:$0xff]  ;;  %1096 = vmatmul.mubr.msk.f32.vlgmr.msra.gmra.mxu0 %vm367_vm2, %v359_v3  ;;  %v521_v13 = vld [vmem:[%s1325_s9 + $0x19] sm:$0xff]  ;;  %v364_v16 = vld [vmem:[%s1325_s9 + $0x30] sm:$0xff]  ;;  %v1403_v36 = vstv %s1064_s6  ;;  %vm675_vm6 = vcmask 260096   ;;  %vm757_vm8 = vcmask 253952  }
  0x22   : > { %1108 = vmatpush3.msk.msra.mxu1 %vm392_vm1, %v1050_v5  ;;  %v1060_v8 = vld [vmem:[%s1481_s2 + $0x2] sm:$0x3]  ;;  %1098 = vmatprep.mubr.msk.f32.mxu0 %vm367_vm2, %v360_v4  ;;  %v523_v17 = vld [vmem:[%s1325_s9 + $0x29] sm:$0xff]  ;;  %v524_v18 = vld [vmem:[%s1325_s9 + $0x31] sm:$0xff]  ;;  %v772_v34 = vadd.s32 8, %v1396_v28  ;;  %v774_v41 = vadd.s32 24, %v1396_v28  ;;  %v780_v50 = vadd.s32 %v1403_v36, %v1396_v28 }
  0x23   : > { %1109 = vmatprep.mubr.msk.f32.mxu1 %vm367_vm2, %v518_v6  ;;  %v362_v11 = vld [vmem:[%s1325_s9 + $0x20] sm:$0xff]  ;;  %1121 = vmatprep.subr.mxu0 %v1243_v12  ;;  %v365_v19 = vld [vmem:[%s1325_s9 + $0x38] sm:$0xff]  ;;  %v773_v49 = vadd.s32 16, %v1396_v28  ;;  %v775_v55 = vadd.s32 32, %v1396_v28  ;;  %v776_v56 = vadd.s32 40, %v1396_v28  ;;  %v778_v4 = vadd.s32 56, %v1396_v28 }
  0x24   : > { %1110 = vmatmul.mubr.msk.f32.vlgmr.msra.gmra.mxu1 %vm367_vm2, %v519_v7  ;;  %1122 = vmatpush3.msk.msra.mxu0 %vm392_vm1, %v1060_v8  ;;  %v522_v14 = vld [vmem:[%s1325_s9 + $0x21] sm:$0xff]  ;;  %v525_v20 = vld [vmem:[%s1325_s9 + $0x39] sm:$0x7f]  ;;  %v678_v21 = vld [vmem:[%s1330_s13] sm:$0x1]  ;;  %v781_v44 = vadd.s32 %v1403_v36, %v772_v34  ;;  %v783_v52 = vadd.s32 %v1403_v36, %v774_v41  ;;  %vm788_vm7 = vcmp.lt.s32.totalorder %v780_v50, 159 }
  0x25   : > { %1112 = vmatprep.mubr.msk.f32.mxu1 %vm367_vm2, %v520_v9  ;;  %1099 = vmatmul.mubr.msk.f32.gmra.mxu0 %vm367_vm2, %v361_v10  ;;  %v782_v61 = vadd.s32 %v1403_v36, %v773_v49  ;;  %v784_v5 = vadd.s32 %v1403_v36, %v775_v55  ;;  %v785_v6 = vadd.s32 %v1403_v36, %v776_v56  ;;  %v777_v9 = vadd.s32 48, %v1396_v28 }
  0x26   : > { %1101 = vmatprep.mubr.msk.f32.mxu0 %vm367_vm2, %v362_v11  ;;  %vm789_vm5 = vcmp.lt.s32.totalorder %v781_v44, 159  ;;  %vm791_vm9 = vcmp.lt.s32.totalorder %v783_v52, 159 }
  0x27   : > { %vm790_vm10 = vcmp.lt.s32.totalorder %v782_v61, 159  ;;  %vm793_vm11 = vcmp.lt.s32.totalorder %v785_v6, 159  ;;  %v786_v23 = vadd.s32 %v1403_v36, %v777_v9  ;;  %vm792_vm12 = vcmp.lt.s32.totalorder %v784_v5, 159 }
  0x28   : > { %1113 = vmatmul.mubr.msk.f32.gmra.mxu1 %vm367_vm2, %v521_v13 }
  0x29   : > { %1115 = vmatprep.mubr.msk.f32.mxu1 %vm367_vm2, %v522_v14  ;;  %1102 = vmatmul.mubr.msk.f32.gmra.mxu0 %vm367_vm2, %v363_v15  ;;  %vm794_vm14 = vcmp.lt.s32.totalorder %v786_v23, 159 }
  0x2a   : > { %1104 = vmatprep.mubr.msk.f32.mxu0 %vm367_vm2, %v364_v16 }
  0x2c   : > { %1116 = vmatmul.mubr.msk.f32.gmra.mxu1 %vm367_vm2, %v523_v17 }
  0x2d   : > { %1118 = vmatprep.mubr.msk.f32.mxu1 %vm367_vm2, %v524_v18  ;;  %1105 = vmatmul.mubr.msk.f32.gmra.mxu0 %vm367_vm2, %v365_v19 }
  0x2e   : > { %1123 = vmatprep.mubr.msk.f32.mxu0 %vm1244_vm3, %v1243_v12 }
  0x30   : > { %1119 = vmatmul.mubr.msk.f32.gmra.mxu1 %vm367_vm2, %v525_v20  ;;  %v787_v20 = vadd.s32 %v1403_v36, %v778_v4 }
  0x31   : > { %1124 = vmatmul.mubr.msk.f32.vlgmr.msra.gmra.mxu0 %vm367_vm2, %v678_v21 }
  0x32   : > { %vm795_vm13 = vcmp.lt.s32.totalorder %v787_v20, 159 }
  0xe1   : > { %v1097_v22 = vpop.f32.mrf.mxu0 }
  0xe2   : > { %503 = vst.msk [vmem:[#allocation2 + $0x8] sm:$0xff] %vm501_vm4, %v1097_v22 }
  0xe3   : > { %v462_v24 = vpop.f32.mrf.mxu0 }
  0xe4   : > { %v1111_v25 = vpop.f32.mrf.mxu1  ;;  %502 = vst.msk [vmem:[#allocation2] sm:$0xff] %vm501_vm4, %v462_v24 }
  0xe5   : > { %v1100_v26 = vpop.f32.mrf.mxu0 }
  0xe6   : > { %v621_v27 = vpop.f32.mrf.mxu1  ;;  %505 = vst.msk [vmem:[#allocation2 + $0x18] sm:$0xff] %vm501_vm4, %v1100_v26 }
  0xe7   : > { %v472_v29 = vpop.f32.mrf.mxu0 }
  0xe8   : > { %v1114_v30 = vpop.f32.mrf.mxu1  ;;  %504 = vst.msk [vmem:[#allocation2 + $0x10] sm:$0xff] %vm501_vm4, %v472_v29 }
  0xe9   : > { %v511_v31 = vld [vmem:[#allocation2 + $0x8] sm:$0xff]  ;;  %v1103_v32 = vpop.f32.mrf.mxu0 }
  0xea   : > { %v631_v33 = vpop.f32.mrf.mxu1  ;;  %v661_v35 = vadd.f32 %v1111_v25, %v511_v31  ;;  %507 = vst.msk [vmem:[#allocation2 + $0x28] sm:$0xff] %vm501_vm4, %v1103_v32 }
  0xeb   : > { %v510_v37 = vld [vmem:[#allocation2] sm:$0xff]  ;;  %v482_v38 = vpop.f32.mrf.mxu0 }
  0xec   : > { %v1117_v39 = vpop.f32.mrf.mxu1  ;;  %669 = vst.msk [vmem:[#allocation2 + $0x8] sm:$0xff] %vm501_vm4, %v661_v35  ;;  %v660_v40 = vadd.f32 %v621_v27, %v510_v37  ;;  %506 = vst.msk [vmem:[#allocation2 + $0x20] sm:$0xff] %vm501_vm4, %v482_v38 }
  0xed   : > { %v513_v42 = vld [vmem:[#allocation2 + $0x18] sm:$0xff]  ;;  %v1106_v43 = vpop.f32.mrf.mxu0 }
  0xee   : > { %668 = vst.msk [vmem:[#allocation2] sm:$0xff] %vm501_vm4, %v660_v40  ;;  %v663_v45 = vadd.f32 %v1114_v30, %v513_v42  ;;  %509 = vst.msk [vmem:[#allocation2 + $0x38] sm:$0xff] %vm501_vm4, %v1106_v43  ;;  %v641_v48 = vpop.f32.mrf.mxu1 }
  0xef   : > { %v512_v46 = vld [vmem:[#allocation2 + $0x10] sm:$0xff]  ;;  %v492_v47 = vpop.f32.mrf.mxu0 }
  0xf0   : > { %671 = vst.msk [vmem:[#allocation2 + $0x18] sm:$0xff] %vm501_vm4, %v663_v45  ;;  %v662_v51 = vadd.f32 %v631_v33, %v512_v46  ;;  %508 = vst.msk [vmem:[#allocation2 + $0x30] sm:$0xff] %vm501_vm4, %v492_v47  ;;  %v1120_v60 = vpop.f32.mrf.mxu1 }
  0xf1   : > { %v515_v53 = vld [vmem:[#allocation2 + $0x28] sm:$0xff]  ;;  %v752_v54 = vpop.f32.mrf.mxu0 }
  0xf2   : > { %670 = vst.msk [vmem:[#allocation2 + $0x10] sm:$0xff] %vm501_vm4, %v662_v51  ;;  %v665_v57 = vadd.f32 %v1117_v39, %v515_v53  ;;  %v651_v12 = vpop.f32.mrf.mxu1 }
  0xf3   : > { %v760_v58 = vld [vmem:[#allocation2 + $0x8] sm:$0xff]  ;;  %v514_v59 = vld [vmem:[#allocation2 + $0x20] sm:$0xff]  ;;  %v1125_v62 = vpop.f32.mrf.mxu0 }
  0xf4   : > { %673 = vst.msk [vmem:[#allocation2 + $0x28] sm:$0xff] %vm501_vm4, %v665_v57  ;;  %v664_v63 = vadd.f32 %v641_v48, %v514_v59  ;;  %v813_v0 = vsel %vm789_vm5, %v760_v58, 0.0 }
  0xf5   : > { %v759_v1 = vld [vmem:[#allocation2] sm:$0xff]  ;;  %v517_v2 = vld [vmem:[#allocation2 + $0x38] sm:$0x7f]  ;;  %v677_v3 = vld [vmem:[#allocation2 + $0x3f] sm:$0x1]  ;;  %v846_v16 = vmul.f32 %v813_v0, %v813_v0  ;;  %v822_v21 = vsel %vm501_vm4, %v813_v0, 0.0 }
  0xf6   : > { %672 = vst.msk [vmem:[#allocation2 + $0x20] sm:$0xff] %vm501_vm4, %v664_v63  ;;  %v667_v7 = vadd.f32 %v1120_v60, %v517_v2  ;;  %v756_v8 = vadd.f32 %v752_v54, %v677_v3  ;;  %v812_v10 = vsel %vm788_vm7, %v759_v1, 0.0 }
  0xf7   : > { %v516_v11 = vld [vmem:[#allocation2 + $0x30] sm:$0xff]  ;;  %v762_v13 = vld [vmem:[#allocation2 + $0x18] sm:$0xff]  ;;  %v821_v14 = vsel %vm501_vm4, %v812_v10, 0.0  ;;  %v845_v15 = vmul.f32 %v812_v10, %v812_v10  ;;  %v854_v30 = vsel %vm501_vm4, %v846_v16, 0.0 }
  0xf8   : > { %676 = vst.msk [vmem:[#allocation2 + $0x38] sm:$0x7f] %vm675_vm6, %v667_v7  ;;  %v666_v17 = vadd.f32 %v651_v12, %v516_v11  ;;  %v815_v18 = vsel %vm791_vm9, %v762_v13, 0.0  ;;  %v823_v25 = vadd.f32 %v822_v21, %v821_v14  ;;  %v820_v11 = vld [vmem:[%s1336_s27] sm:$0x1] }
  0xf9   : > { %758 = vst.msk [vmem:[#allocation2 + $0x3f] sm:$0x1] %vm757_vm8, %v756_v8  ;;  %v761_v19 = vld [vmem:[#allocation2 + $0x10] sm:$0xff]  ;;  %v853_v22 = vsel %vm501_vm4, %v845_v15, 0.0  ;;  %v848_v29 = vmul.f32 %v815_v18, %v815_v18  ;;  %v826_v35 = vsel %vm501_vm4, %v815_v18, 0.0 }
  0xfa   : > { %674 = vst.msk [vmem:[#allocation2 + $0x30] sm:$0xff] %vm501_vm4, %v666_v17  ;;  %v814_v24 = vsel %vm790_vm10, %v761_v19, 0.0  ;;  %v855_v33 = vadd.f32 %v854_v30, %v853_v22  ;;  %v844_v14 = vld [vmem:[%s1341_s30] sm:$0x1] }
  0xfb   : > { %v764_v26 = vld [vmem:[#allocation2 + $0x28] sm:$0xff]  ;;  %v824_v27 = vsel %vm501_vm4, %v814_v24, 0.0  ;;  %v847_v28 = vmul.f32 %v814_v24, %v814_v24  ;;  %v858_v44 = vsel %vm501_vm4, %v848_v29, 0.0 }
  0xfc   : > { %v817_v31 = vsel %vm793_vm11, %v764_v26, 0.0  ;;  %v825_v32 = vadd.f32 %v824_v27, %v823_v25 }
  0xfd   : > { %v763_v34 = vld [vmem:[#allocation2 + $0x20] sm:$0xff]  ;;  %v856_v36 = vsel %vm501_vm4, %v847_v28, 0.0  ;;  %v850_v43 = vmul.f32 %v817_v31, %v817_v31  ;;  %v830_v49 = vsel %vm501_vm4, %v817_v31, 0.0 }
  0xfe   : > { %v816_v37 = vsel %vm792_vm12, %v763_v34, 0.0  ;;  %v827_v38 = vadd.f32 %v826_v35, %v825_v32  ;;  %v857_v39 = vadd.f32 %v856_v36, %v855_v33 }
  0xff   : > { %v828_v41 = vsel %vm501_vm4, %v816_v37, 0.0  ;;  %v849_v42 = vmul.f32 %v816_v37, %v816_v37  ;;  %v862_v57 = vsel %vm501_vm4, %v850_v43, 0.0 }
 0x100   : > { %v766_v40 = vld [vmem:[#allocation2 + $0x38] sm:$0xff]  ;;  %v829_v46 = vadd.f32 %v828_v41, %v827_v38  ;;  %v859_v47 = vadd.f32 %v858_v44, %v857_v39 }
 0x101   : > { %v819_v45 = vsel %vm795_vm13, %v766_v40, 0.0  ;;  %v765_v48 = vld [vmem:[#allocation2 + $0x30] sm:$0xff]  ;;  %v860_v50 = vsel %vm501_vm4, %v849_v42, 0.0 }
 0x102   : > { %v818_v51 = vsel %vm794_vm14, %v765_v48, 0.0  ;;  %v831_v52 = vadd.f32 %v830_v49, %v829_v46  ;;  %v861_v53 = vadd.f32 %v860_v50, %v859_v47  ;;  %v852_v56 = vmul.f32 %v819_v45, %v819_v45 }
 0x103   : > { %v832_v54 = vsel %vm501_vm4, %v818_v51, 0.0  ;;  %v851_v55 = vmul.f32 %v818_v51, %v818_v51  ;;  %v834_v60 = vsel %vm501_vm4, %v819_v45, 0.0 }
 0x104   : > { %v833_v58 = vadd.f32 %v832_v54, %v831_v52  ;;  %v863_v59 = vadd.f32 %v862_v57, %v861_v53  ;;  %v866_v0 = vsel %vm501_vm4, %v852_v56, 0.0 }
 0x105   : > { %v864_v61 = vsel %vm501_vm4, %v851_v55, 0.0 }
 0x106   : > { %v835_v62 = vadd.f32 %v834_v60, %v833_v58  ;;  %v865_v63 = vadd.f32 %v864_v61, %v863_v59 }
 0x108   : > { %v836_v1 = vrot.slane %v835_v62, 4  ;;  %v867_v2 = vadd.f32 %v866_v0, %v865_v63 }
 0x10a   : > { %v837_v3 = vadd.f32 %v836_v1, %v835_v62  ;;  %v868_v4 = vrot.slane %v867_v2, 4 }
 0x10c   : > { %v838_v5 = vrot.slane %v837_v3, 2  ;;  %v869_v6 = vadd.f32 %v868_v4, %v867_v2 }
 0x10e   : > { %v839_v7 = vadd.f32 %v838_v5, %v837_v3  ;;  %v870_v8 = vrot.slane %v869_v6, 2 }
 0x110   : > { %v840_v9 = vrot.slane %v839_v7, 1  ;;  %v871_v10 = vadd.f32 %v870_v8, %v869_v6 }
 0x112   : > { %v841_v12 = vadd.f32 %v840_v9, %v839_v7  ;;  %v872_v13 = vrot.slane %v871_v10, 1 }
 0x114   : > { %v842_v15 = vadd.f32 %v841_v12, %v820_v11  ;;  %v873_v16 = vadd.f32 %v872_v13, %v871_v10 }
 0x116   : > { %843 = vst.msk [vmem:[%s1336_s27] sm:$0x1] %vm757_vm8, %v842_v15  ;;  %v874_v17 = vadd.f32 %v873_v16, %v844_v14 }
 0x118   : > { %875 = vst.msk [vmem:[%s1341_s30] sm:$0x1] %vm757_vm8, %v874_v17 }
 0x119 PF: > { %s15_s21 = sadd.s32 1, %s1240_s21   ;;  %s1486_s26 = sld [smem:[#allocation3_spill]] }
 0x11a   : > { %p12_p11 = scmp.ge.s32.totalorder %s15_s21, 10   ;;  %s1487_s7 = sld [smem:[#allocation4_spill]] }
 0x11b   : > { %s1488_s15 = smov %s1228_s18  ;;  %s1489_s16 = smov %s1232_s19 }
 0x11c   : > { %s1490_s17 = smov %s1236_s20  ;;  %s1491_s18 = smov %s1495_s22 }
 0x11d   :  { %14 = sbr.rel (!%p12_p11) target bundleno = 4 (0x4), region = 82 }
 0x11f   : > { %s1492_s19 = smov %s1486_s26 }
 0x120   : > { %s1493_s20 = smov %s1487_s7 }

// kernel: _lambda_.5
= control target key start
LH: loop header
LB: loop body
LE: loop exit
PB: predicated region body
PF: predicated region fallthrough
CT: control target
= control target key end

     0   :  { %s1249_s18 = smov 0   ;;  %s1251_s19 = smov 0   ;;  %s1404_s0 = inlined_call_operand.vmem [shape: f32[2,264,2], index: 0, kind: input, shape index: {}, may-alias: {0,1}]   ;;  %s1405_s1 = inlined_call_operand.vmem [shape: f32[2,264,2], index: 1, kind: input, shape index: {}, may-alias: {0,1}]   ;;  %s1406_s2 = inlined_call_operand.vmem [shape: f32[2,2,32], index: 2, kind: input, shape index: {}]   ;;  %s1407_s3 = inlined_call_operand.vmem [shape: f32[2,1,32], index: 3, kind: input, shape index: {}]   ;;  %s1408_s4 = inlined_call_operand.vmem [shape: f32[2,1,32], index: 4, kind: input, shape index: {}]   ;;  %s1409_s5 = inlined_call_operand.vmem [shape: bf16[2,256,32], index: 5, kind: output, shape index: {}]  }
   0x1   :  { %s1253_s20 = smov 0   ;;  %s1255_s21 = smov 0  }
   0x2   :  { %s1257_s22 = smov 0  }
   0x3 LB: > { %s24_s23 = sadd.s32 1, %s1207_s20  ;;  %s27_s24 = sadd.s32 1, %s1211_s21  ;;  %s1215_s22 = sphi %s1257_s22, %s15_s22   ;;  %s1211_s21 = sphi %s1255_s21, %s1413_s21   ;;  %s1207_s20 = sphi %s1253_s20, %s1412_s20   ;;  %s1203_s19 = sphi %s1251_s19, %s1411_s19   ;;  %s1199_s18 = sphi %s1249_s18, %s1410_s18  }
   0x4   : > { %p25_p0 = scmp.ge.s32.totalorder %s24_s23, 4  ;;  %p1009_p1 = scmp.ge.s32.totalorder %s1215_s22, 1 }
   0x5   : > { %p255_p2 = scmp.lt.s32.totalorder %s1215_s22, 9 }
   0x6   : > { %s1415_s23 = smov (%p25_p0, %s24_s23), 0  ;;  %s1417_s24 = smov (!%p25_p0, %s27_s24), %s1211_s21 }
   0x7   : > { %p256_p3 = pnand %p1009_p1, %p255_p2  ;;  %p29_p4 = scmp.ge.s32.totalorder %s1417_s24, 2 }
   0x8   : > { %s1282_s27 = sshll.u32 (!%p256_p3), %s1199_s18, 3  ;;  %p316_p5 = scmp.lt.s32.totalorder (!%p256_p3), %s1203_s19, 1 }
   0x9   : > { %s1419_s24 = smov (%p29_p4, %s1417_s24), 0  ;;  %259 = sbr.rel (%p256_p3) target bundleno = 275 (0x113), region = 40 }
   0xa   : > { %p318_p6 = scmp.lt.s32.totalorder (!%p256_p3), %s1282_s27, 32  ;;  %s1056_s7 = sadd.s32 (!%p256_p3), 8, %s1282_s27 }
   0xb   : > { %p333_p7 = scmp.lt.s32.totalorder (!%p256_p3), %s1056_s7, 32  ;;  %p350_p8 = scmp.lt.s32.totalorder (!%p256_p3), %s1282_s27, 31 }
   0xe   : > { %v365_v0 = vld [vmem:[%s1406_s2] sm:$0x3]  ;;  %vm391_vm0 = vcmask 1041408   ;;  %v1026_v1 = vld [vmem:[%s1406_s2 + $0x2] sm:$0x3]  ;;  %s1421_s19 = smov (!%p316_p5, %s1203_s19), 1 }
   0xf   : > { %1085 = vmatprep.subr.msk.mxu0 %vm391_vm0, %v365_v0  ;;  %1099 = vmatprep.subr.msk.mxu1 %vm391_vm0, %v1026_v1  ;;  %s319_s30 = scalar_select %p318_p6, %s1282_s27, 32  ;;  %v1217_v2 = vmov 0.0   ;;  %vm366_vm1 = vcmask 15360   ;;  %v1036_v8 = vld [vmem:[%s1406_s2 + $0x2] sm:$0x3]  ;;  %vm1218_vm2 = vmmov 0  }
  0x10   : > { %1086 = vmatpush3.msk.msra.mxu0 %vm391_vm0, %v365_v0  ;;  %1100 = vmatpush3.msk.msra.mxu1 %vm391_vm0, %v1026_v1  ;;  %s1118_s6 = smul.u32 33, %s1421_s19  ;;  %s1423_s7 = smov (!%p333_p7, %s1056_s7), 32  ;;  %vm500_vm3 = vcmask 261120   ;;  %vm674_vm4 = vcmask 260096   ;;  %vm756_vm5 = vcmask 253952   ;;  %vm868_vm6 = vcmask 257024  }
  0x11   : > { %1113 = vmatprep.subr.mxu0 %v1217_v2  ;;  %s343_s29 = scalar_lea.vmem %s1407_s3, %s1421_s19  ;;  %s1425_s27 = smov (!%p350_p8, %s1282_s27), 31 }
  0x12   : > { %s321_s8 = sadd.s32 %s1118_s6, %s319_s30  ;;  %s336_s15 = sadd.s32 %s1118_s6, %s1423_s7  ;;  %v1039_v43 = vld [vmem:[%s343_s29] ss:$0 sm:$0xff] }
  0x13   : > { %s1011_s9 = sshll.u32 %s321_s8, 3  ;;  %s1013_s16 = sshll.u32 %s336_s15, 3 }
  0x14   : > { %s1300_s12 = scalar_lea.vmem %s1404_s0, %s1011_s9  ;;  %s338_s25 = scalar_lea.vmem %s1405_s1, %s1013_s16 }
  0x15   : > { %v357_v3 = vld [vmem:[%s1300_s12] sm:$0xff]  ;;  %v358_v4 = vld [vmem:[%s1300_s12 + $0x8] sm:$0xff]  ;;  %v359_v5 = vld [vmem:[%s1300_s12 + $0x10] sm:$0xff]  ;;  %s346_s7 = scalar_lea.vmem %s1408_s4, %s1421_s19  ;;  %s1015_s8 = sshll.u32 %s1421_s19, 5 }
  0x16   : > { %1087 = vmatprep.mubr.msk.f32.mxu0 %vm366_vm1, %v357_v3  ;;  %v517_v6 = vld [vmem:[%s1300_s12 + $0x1] sm:$0xff]  ;;  %v518_v7 = vld [vmem:[%s1300_s12 + $0x9] sm:$0xff]  ;;  %v519_v9 = vld [vmem:[%s1300_s12 + $0x11] sm:$0xff]  ;;  %s353_s9 = sadd.s32 %s1015_s8, %s1425_s27 }
  0x17   : > { %1088 = vmatmul.mubr.msk.f32.vlgmr.msra.gmra.mxu0 %vm366_vm1, %v358_v4  ;;  %1101 = vmatprep.mubr.msk.f32.mxu1 %vm366_vm1, %v517_v6  ;;  %v360_v10 = vld [vmem:[%s1300_s12 + $0x18] sm:$0xff]  ;;  %v361_v11 = vld [vmem:[%s1300_s12 + $0x20] sm:$0xff]  ;;  %v362_v14 = vld [vmem:[%s1300_s12 + $0x28] sm:$0xff]  ;;  %s1016_s10 = sshll.u32 %s353_s9, 2 }
  0x18   : > { %1090 = vmatprep.mubr.msk.f32.mxu0 %vm366_vm1, %v359_v5  ;;  %1102 = vmatmul.mubr.msk.f32.vlgmr.msra.gmra.mxu1 %vm366_vm1, %v518_v7  ;;  %v520_v12 = vld [vmem:[%s1300_s12 + $0x19] sm:$0xff]  ;;  %v521_v13 = vld [vmem:[%s1300_s12 + $0x21] sm:$0xff]  ;;  %v363_v15 = vld [vmem:[%s1300_s12 + $0x30] sm:$0xff] }
  0x19   : > { %1114 = vmatpush3.msk.msra.mxu0 %vm391_vm0, %v1036_v8  ;;  %1104 = vmatprep.mubr.msk.f32.mxu1 %vm366_vm1, %v519_v9  ;;  %v522_v16 = vld [vmem:[%s1300_s12 + $0x29] sm:$0xff]  ;;  %v523_v17 = vld [vmem:[%s1300_s12 + $0x31] sm:$0xff]  ;;  %v524_v19 = vld [vmem:[%s1300_s12 + $0x39] sm:$0x7f] }
  0x1a   : > { %v364_v18 = vld [vmem:[%s1300_s12 + $0x38] sm:$0xff]  ;;  %v677_v20 = vld [vmem:[%s338_s25] sm:$0x1]  ;;  %s1371_s12 = scalar_lea.vmem %s1409_s5, %s1016_s10 }
  0x1b   : > { %1091 = vmatmul.mubr.msk.f32.gmra.mxu0 %vm366_vm1, %v360_v10  ;;  %v1040_v48 = vld [vmem:[%s346_s7] ss:$0 sm:$0xff] }
  0x1c   : > { %1093 = vmatprep.mubr.msk.f32.mxu0 %vm366_vm1, %v361_v11  ;;  %1105 = vmatmul.mubr.msk.f32.gmra.mxu1 %vm366_vm1, %v520_v12 }
  0x1d   : > { %1107 = vmatprep.mubr.msk.f32.mxu1 %vm366_vm1, %v521_v13 }
  0x1f   : > { %1094 = vmatmul.mubr.msk.f32.gmra.mxu0 %vm366_vm1, %v362_v14 }
  0x20   : > { %1096 = vmatprep.mubr.msk.f32.mxu0 %vm366_vm1, %v363_v15  ;;  %1108 = vmatmul.mubr.msk.f32.gmra.mxu1 %vm366_vm1, %v522_v16 }
  0x21   : > { %1110 = vmatprep.mubr.msk.f32.mxu1 %vm366_vm1, %v523_v17 }
  0x23   : > { %1097 = vmatmul.mubr.msk.f32.gmra.mxu0 %vm366_vm1, %v364_v18 }
  0x24   : > { %1111 = vmatmul.mubr.msk.f32.gmra.mxu1 %vm366_vm1, %v524_v19  ;;  %1115 = vmatprep.mubr.msk.f32.mxu0 %vm1218_vm2, %v1217_v2 }
  0x27   : > { %1116 = vmatmul.mubr.msk.f32.vlgmr.msra.gmra.mxu0 %vm366_vm1, %v677_v20 }
  0xd7   : > { %v1089_v21 = vpop.f32.mrf.mxu0 }
  0xd8   : > { %502 = vst.msk [vmem:[#allocation2 + $0x8] sm:$0xff] %vm500_vm3, %v1089_v21  ;;  %v1103_v22 = vpop.f32.mrf.mxu1 }
  0xd9   : > { %v461_v23 = vpop.f32.mrf.mxu0 }
  0xda   : > { %501 = vst.msk [vmem:[#allocation2] sm:$0xff] %vm500_vm3, %v461_v23  ;;  %v620_v24 = vpop.f32.mrf.mxu1 }
  0xdb   : > { %v1092_v25 = vpop.f32.mrf.mxu0 }
  0xdc   : > { %504 = vst.msk [vmem:[#allocation2 + $0x18] sm:$0xff] %vm500_vm3, %v1092_v25  ;;  %v1106_v26 = vpop.f32.mrf.mxu1 }
  0xdd   : > { %v471_v27 = vpop.f32.mrf.mxu0 }
  0xde   : > { %503 = vst.msk [vmem:[#allocation2 + $0x10] sm:$0xff] %vm500_vm3, %v471_v27  ;;  %v630_v28 = vpop.f32.mrf.mxu1 }
  0xdf   : > { %v510_v29 = vld [vmem:[#allocation2 + $0x8] sm:$0xff]  ;;  %v1095_v30 = vpop.f32.mrf.mxu0 }
  0xe0   : > { %v660_v31 = vadd.f32 %v1103_v22, %v510_v29  ;;  %506 = vst.msk [vmem:[#allocation2 + $0x28] sm:$0xff] %vm500_vm3, %v1095_v30  ;;  %v1109_v35 = vpop.f32.mrf.mxu1 }
  0xe1   : > { %v509_v32 = vld [vmem:[#allocation2] sm:$0xff]  ;;  %v481_v33 = vpop.f32.mrf.mxu0 }
  0xe2   : > { %668 = vst.msk [vmem:[#allocation2 + $0x8] sm:$0xff] %vm500_vm3, %v660_v31  ;;  %v659_v34 = vadd.f32 %v620_v24, %v509_v32  ;;  %505 = vst.msk [vmem:[#allocation2 + $0x20] sm:$0xff] %vm500_vm3, %v481_v33  ;;  %v640_v42 = vpop.f32.mrf.mxu1 }
  0xe3   : > { %v512_v36 = vld [vmem:[#allocation2 + $0x18] sm:$0xff]  ;;  %v1098_v37 = vpop.f32.mrf.mxu0 }
  0xe4   : > { %667 = vst.msk [vmem:[#allocation2] sm:$0xff] %vm500_vm3, %v659_v34  ;;  %v662_v38 = vadd.f32 %v1106_v26, %v512_v36  ;;  %508 = vst.msk [vmem:[#allocation2 + $0x38] sm:$0xff] %vm500_vm3, %v1098_v37  ;;  %v1112_v53 = vpop.f32.mrf.mxu1 }
  0xe5   : > { %v511_v39 = vld [vmem:[#allocation2 + $0x10] sm:$0xff]  ;;  %v491_v40 = vpop.f32.mrf.mxu0 }
  0xe6   : > { %670 = vst.msk [vmem:[#allocation2 + $0x18] sm:$0xff] %vm500_vm3, %v662_v38  ;;  %v661_v41 = vadd.f32 %v630_v28, %v511_v39  ;;  %507 = vst.msk [vmem:[#allocation2 + $0x30] sm:$0xff] %vm500_vm3, %v491_v40  ;;  %v650_v2 = vpop.f32.mrf.mxu1 }
  0xe7   : > { %v514_v44 = vld [vmem:[#allocation2 + $0x28] sm:$0xff]  ;;  %v751_v45 = vpop.f32.mrf.mxu0 }
  0xe8   : > { %669 = vst.msk [vmem:[#allocation2 + $0x10] sm:$0xff] %vm500_vm3, %v661_v41  ;;  %v664_v46 = vadd.f32 %v1109_v35, %v514_v44 }
  0xe9   : > { %v759_v47 = vld [vmem:[#allocation2 + $0x8] sm:$0xff]  ;;  %v513_v49 = vld [vmem:[#allocation2 + $0x20] sm:$0xff]  ;;  %v1117_v50 = vpop.f32.mrf.mxu0 }
  0xea   : > { %v774_v51 = vmul.f32 %v1039_v43, %v759_v47  ;;  %672 = vst.msk [vmem:[#allocation2 + $0x28] sm:$0xff] %vm500_vm3, %v664_v46  ;;  %v663_v52 = vadd.f32 %v640_v42, %v513_v49 }
  0xeb   : > { %v758_v54 = vld [vmem:[#allocation2] sm:$0xff]  ;;  %v516_v55 = vld [vmem:[#allocation2 + $0x38] sm:$0x7f]  ;;  %v676_v56 = vld [vmem:[#allocation2 + $0x3f] sm:$0x1] }
  0xec   : > { %v789_v57 = vadd.f32 %v1040_v48, %v774_v51  ;;  %v773_v58 = vmul.f32 %v1039_v43, %v758_v54  ;;  %671 = vst.msk [vmem:[#allocation2 + $0x20] sm:$0xff] %vm500_vm3, %v663_v52  ;;  %v666_v59 = vadd.f32 %v1112_v53, %v516_v55  ;;  %v755_v60 = vadd.f32 %v751_v45, %v676_v56 }
  0xed   : > { %v761_v61 = vld [vmem:[#allocation2 + $0x18] sm:$0xff]  ;;  %v515_v62 = vld [vmem:[#allocation2 + $0x30] sm:$0xff] }
  0xee   : > { %v805_v63 = vmul.f32 0.70710677, %v789_v57  ;;  %v788_v0 = vadd.f32 %v1040_v48, %v773_v58  ;;  %v776_v1 = vmul.f32 %v1039_v43, %v761_v61  ;;  %675 = vst.msk [vmem:[#allocation2 + $0x38] sm:$0x7f] %vm674_vm4, %v666_v59  ;;  %v665_v4 = vadd.f32 %v650_v2, %v515_v62 }
  0xef   : > { %757 = vst.msk [vmem:[#allocation2 + $0x3f] sm:$0x1] %vm756_vm5, %v755_v60  ;;  %v760_v3 = vld [vmem:[#allocation2 + $0x10] sm:$0xff]  ;;  %v797_v28 = vmul.f32 0.5, %v789_v57 }
  0xf0   : > { %1161 = verf.f32 %v805_v63  ;;  %v804_v5 = vmul.f32 0.70710677, %v788_v0  ;;  %v791_v6 = vadd.f32 %v1040_v48, %v776_v1  ;;  %v775_v7 = vmul.f32 %v1039_v43, %v760_v3  ;;  %673 = vst.msk [vmem:[#allocation2 + $0x30] sm:$0xff] %vm500_vm3, %v665_v4 }
  0xf1   : > { %v763_v8 = vld [vmem:[#allocation2 + $0x28] sm:$0xff]  ;;  %v796_v32 = vmul.f32 0.5, %v788_v0 }
  0xf2   : > { %1163 = verf.f32 %v804_v5  ;;  %v807_v9 = vmul.f32 0.70710677, %v791_v6  ;;  %v778_v10 = vmul.f32 %v1039_v43, %v763_v8  ;;  %v790_v11 = vadd.f32 %v1040_v48, %v775_v7 }
  0xf3   : > { %v762_v12 = vld [vmem:[#allocation2 + $0x20] sm:$0xff]  ;;  %v799_v37 = vmul.f32 0.5, %v791_v6 }
  0xf4   : > { %1165 = verf.f32 %v807_v9  ;;  %v793_v13 = vadd.f32 %v1040_v48, %v778_v10  ;;  %v777_v14 = vmul.f32 %v1039_v43, %v762_v12  ;;  %v806_v15 = vmul.f32 0.70710677, %v790_v11 }
  0xf6   : > { %v765_v16 = vld [vmem:[#allocation2 + $0x38] sm:$0xff]  ;;  %v809_v17 = vmul.f32 0.70710677, %v793_v13  ;;  %v792_v18 = vadd.f32 %v1040_v48, %v777_v14  ;;  %1167 = verf.f32 %v806_v15  ;;  %v801_v46 = vmul.f32 0.5, %v793_v13 }
  0xf7   : > { %v780_v19 = vmul.f32 %v1039_v43, %v765_v16  ;;  %v764_v21 = vld [vmem:[#allocation2 + $0x30] sm:$0xff] }
  0xf8   : > { %1169 = verf.f32 %v809_v17  ;;  %v808_v20 = vmul.f32 0.70710677, %v792_v18  ;;  %v779_v23 = vmul.f32 %v1039_v43, %v764_v21  ;;  %v798_v43 = vmul.f32 0.5, %v790_v11 }
  0xf9   : > { %v795_v22 = vadd.f32 %v1040_v48, %v780_v19  ;;  %v800_v51 = vmul.f32 0.5, %v792_v18 }
  0xfa   : > { %1171 = verf.f32 %v808_v20  ;;  %v794_v25 = vadd.f32 %v1040_v48, %v779_v23 }
  0xfb   : > { %v811_v24 = vmul.f32 0.70710677, %v795_v22  ;;  %v803_v57 = vmul.f32 0.5, %v795_v22 }
  0xfc   : > { %v810_v27 = vmul.f32 0.70710677, %v794_v25  ;;  %v802_v62 = vmul.f32 0.5, %v794_v25 }
  0xfd   : > { %1173 = verf.f32 %v811_v24  ;;  %v1162_v26 = vpop.eup %1161 }
  0xfe   : > { %v821_v29 = vadd.f32 1.0, %v1162_v26  ;;  %1175 = verf.f32 %v810_v27 }
  0xff   : > { %v1164_v30 = vpop.eup %1163 }
 0x100   : > { %v829_v31 = vmul.f32 %v821_v29, %v797_v28  ;;  %v820_v33 = vadd.f32 1.0, %v1164_v30 }
 0x101   : > { %v1166_v34 = vpop.eup %1165 }
 0x102   : > { %v1058_v35 = vpack.c.bf16 %v829_v31, %v829_v31  ;;  %v828_v36 = vmul.f32 %v820_v33, %v796_v32  ;;  %v823_v38 = vadd.f32 1.0, %v1166_v34 }
 0x103   : > { %v1168_v39 = vpop.eup %1167 }
 0x104   : > { %870 = vst.msk [vmem:[%s1371_s12 + $0x4] sm:$0xf] %vm868_vm6, %v1058_v35  ;;  %v1057_v40 = vpack.c.bf16 %v828_v36, %v828_v36  ;;  %v831_v41 = vmul.f32 %v823_v38, %v799_v37  ;;  %v822_v44 = vadd.f32 1.0, %v1168_v39 }
 0x105   : > { %v1170_v42 = vpop.eup %1169 }
 0x106   : > { %869 = vst.msk [vmem:[%s1371_s12] sm:$0xf] %vm868_vm6, %v1057_v40  ;;  %v1060_v45 = vpack.c.bf16 %v831_v41, %v831_v41  ;;  %v825_v47 = vadd.f32 1.0, %v1170_v42  ;;  %v830_v49 = vmul.f32 %v822_v44, %v798_v43 }
 0x107   : > { %v1172_v48 = vpop.eup %1171 }
 0x108   : > { %872 = vst.msk [vmem:[%s1371_s12 + $0xc] sm:$0xf] %vm868_vm6, %v1060_v45  ;;  %v833_v50 = vmul.f32 %v825_v47, %v801_v46  ;;  %v824_v52 = vadd.f32 1.0, %v1172_v48  ;;  %v1059_v54 = vpack.c.bf16 %v830_v49, %v830_v49 }
 0x10a   : > { %v1174_v53 = vpop.eup %1173  ;;  %v1062_v55 = vpack.c.bf16 %v833_v50, %v833_v50  ;;  %v832_v56 = vmul.f32 %v824_v52, %v800_v51  ;;  %871 = vst.msk [vmem:[%s1371_s12 + $0x8] sm:$0xf] %vm868_vm6, %v1059_v54 }
 0x10b   : > { %v827_v58 = vadd.f32 1.0, %v1174_v53  ;;  %v1176_v59 = vpop.eup %1175 }
 0x10c   : > { %874 = vst.msk [vmem:[%s1371_s12 + $0x14] sm:$0xf] %vm868_vm6, %v1062_v55  ;;  %v1061_v60 = vpack.c.bf16 %v832_v56, %v832_v56  ;;  %v826_v63 = vadd.f32 1.0, %v1176_v59 }
 0x10d   : > { %v835_v61 = vmul.f32 %v827_v58, %v803_v57 }
 0x10e   : > { %873 = vst.msk [vmem:[%s1371_s12 + $0x10] sm:$0xf] %vm868_vm6, %v1061_v60  ;;  %v834_v1 = vmul.f32 %v826_v63, %v802_v62 }
 0x10f   : > { %v1064_v0 = vpack.c.bf16 %v835_v61, %v835_v61 }
 0x110   : > { %v1063_v2 = vpack.c.bf16 %v834_v1, %v834_v1 }
 0x111   : > { %876 = vst.msk [vmem:[%s1371_s12 + $0x1c] sm:$0xf] %vm868_vm6, %v1064_v0 }
 0x112   : > { %875 = vst.msk [vmem:[%s1371_s12 + $0x18] sm:$0xf] %vm868_vm6, %v1063_v2 }
 0x113 PF: > { %s15_s22 = sadd.s32 1, %s1215_s22   ;;  %s1410_s18 = smov %s1207_s20 }
 0x114   : > { %p12_p9 = scmp.ge.s32.totalorder %s15_s22, 10   ;;  %s1411_s19 = smov %s1211_s21 }
 0x115   : > { %s1412_s20 = smov %s1415_s23  ;;  %s1413_s21 = smov %s1419_s24 }
 0x116   :  { %14 = sbr.rel (!%p12_p9) target bundleno = 3 (0x3), region = 80 }

// kernel: _lambda_.6
= control target key start
LH: loop header
LB: loop body
LE: loop exit
PB: predicated region body
PF: predicated region fallthrough
CT: control target
= control target key end

     0   :  { %s1092_s12 = smov 0   ;;  %s1094_s13 = smov 0   ;;  %s1269_s0 = inlined_call_operand.vmem [shape: bf16[2,128,64], index: 0, kind: input, shape index: {}, may-alias: {0,1}]   ;;  %s1270_s1 = inlined_call_operand.vmem [shape: bf16[2,128,64], index: 1, kind: input, shape index: {}, may-alias: {0,1}]   ;;  %s1271_s2 = inlined_call_operand.vmem [shape: bf16[2,64,32], index: 2, kind: input, shape index: {}]   ;;  %s1272_s3 = inlined_call_operand.vmem [shape: bf16[2,96,32], index: 3, kind: output, shape index: {}]  }
   0x1   :  { %s1096_s14 = smov 0   ;;  %s1098_s15 = smov 0  }
   0x2   :  { %s1100_s16 = smov 0  }
   0x3 LB: > { %s22_s17 = sadd.s32 1, %s1060_s14  ;;  %s25_s18 = sadd.s32 1, %s1064_s15  ;;  %s1068_s16 = sphi %s1100_s16, %s13_s16   ;;  %s1064_s15 = sphi %s1098_s15, %s1276_s15   ;;  %s1060_s14 = sphi %s1096_s14, %s1275_s14   ;;  %s1056_s13 = sphi %s1094_s13, %s1274_s13   ;;  %s1052_s12 = sphi %s1092_s12, %s1273_s12  }
   0x4   : > { %p23_p0 = scmp.ge.s32.totalorder %s22_s17, 2  ;;  %p825_p1 = scmp.ge.s32.totalorder %s1068_s16, 1 }
   0x5   : > { %p189_p2 = scmp.lt.s32.totalorder %s1068_s16, 5 }
   0x6   : > { %s1278_s17 = smov (%p23_p0, %s22_s17), 0  ;;  %s1280_s18 = smov (!%p23_p0, %s25_s18), %s1064_s15 }
   0x7   : > { %p190_p3 = pnand %p825_p1, %p189_p2  ;;  %p27_p4 = scmp.ge.s32.totalorder %s1280_s18, 2 }
   0x8   : > { %s235_s25 = smul.u32 (!%p190_p3), 6, %s1052_s12  ;;  %p240_p5 = scmp.lt.s32.totalorder (!%p190_p3), %s1056_s13, 1 }
   0x9   : > { %s1282_s18 = smov (%p27_p4, %s1280_s18), 0  ;;  %193 = sbr.rel (%p190_p3) target bundleno = 286 (0x11e), region = 32 }
   0xa   : > { %p242_p6 = scmp.lt.s32.totalorder (!%p190_p3), %s235_s25, 15  ;;  %p268_p7 = scmp.lt.s32.totalorder (!%p190_p3), %s235_s25, 11 }
   0xb   : > { %s253_s28 = sadd.s32 (!%p190_p3), 1, %s1052_s12 }
   0xe   : > { %v1000_v0 = vld [vmem:[%s1271_s2 + $0x18] sm:$0xff]   ;;  %v1070_v1 = vmov 0.0   ;;  %v1002_v3 = vld [vmem:[%s1271_s2 + $0x10] sm:$0xff]   ;;  %vm1071_vm0 = vmmov 0   ;;  %s1284_s13 = smov (!%p240_p5, %s1056_s13), 1  ;;  %v1004_v5 = vld [vmem:[%s1271_s2 + $0x8] sm:$0xff]  }
   0xf   : > { %905 = vmatprep.subr.bf16.mxu0 %v1070_v1  ;;  %925 = vmatprep.subr.bf16.mxu1 %v1070_v1  ;;  %v1001_v2 = vld [vmem:[%s1271_s2 + $0x38] sm:$0xff]   ;;  %v1003_v4 = vld [vmem:[%s1271_s2 + $0x30] sm:$0xff]   ;;  %s243_s30 = scalar_select %p242_p6, %s235_s25, 15  ;;  %v1005_v6 = vld [vmem:[%s1271_s2 + $0x28] sm:$0xff]   ;;  %vm329_vm1 = vcmask 523264   ;;  %vm396_vm3 = vcmask 261120  }
  0x10   : > { %906 = vmatpush3.bf16.msra.mxu0 %v1000_v0  ;;  %913 = vmatprep.mubr.msk.bf16.mxu0 %vm1071_vm0, %v1070_v1  ;;  %s826_s6 = sshll.u32 %s1284_s13, 4  ;;  %v1006_v7 = vld [vmem:[%s1271_s2] sm:$0xff]   ;;  %s957_s20 = smul.u32 12, %s1284_s13  ;;  %v1011_v12 = vld [vmem:[%s1271_s2 + $0x38] sm:$0xff]   ;;  %vm439_vm2 = vsmask.f32 7424 }
  0x11   : > { %926 = vmatpush3.bf16.msra.mxu1 %v1001_v2  ;;  %907 = vmatprep.subr.bf16.mxu0 %v1070_v1  ;;  %s245_s7 = sadd.s32 %s826_s6, %s243_s30  ;;  %v1007_v8 = vld [vmem:[%s1271_s2 + $0x20] sm:$0xff]   ;;  %s1286_s25 = smov (!%p268_p7, %s235_s25), 11  ;;  %v1014_v19 = vld [vmem:[%s1271_s2 + $0x30] sm:$0xff]   ;;  %v1016_v25 = vld [vmem:[%s1271_s2 + $0x28] sm:$0xff]   ;;  %vm564_vm4 = vcmask 260096   ;;  %vm644_vm5 = vcmask 253952  }
  0x12   : > { %927 = vmatprep.subr.bf16.mxu1 %v1070_v1  ;;  %933 = vmatprep.mubr.msk.bf16.mxu1 %vm1071_vm0, %v1070_v1  ;;  %s827_s19 = sshll.u32 %s245_s7, 2  ;;  %s1177_s24 = sadd.s32 %s957_s20, %s1286_s25  ;;  %v1017_v28 = vld [vmem:[%s1271_s2 + $0x20] sm:$0xff]   ;;  %vm706_vm6 = vcmask 257024  }
  0x13   : > { %s1172_s23 = scalar_lea.vmem %s1269_s0, %s827_s19  ;;  %s254_s30 = smul.u32 6, %s253_s28 }
  0x14   : > { %908 = vmatpush3.bf16.msra.mxu0 %v1002_v3  ;;  %v1008_v9 = vld [vmem:[%s1172_s23] sm:$0xff]   ;;  %v1010_v11 = vld [vmem:[%s1172_s23 + $0x8] sm:$0xff]   ;;  %v1013_v16 = vld [vmem:[%s1172_s23 + $0x10] sm:$0xff]   ;;  %s830_s13 = sshll.u32 %s1177_s24, 2 }
  0x15   : > { %928 = vmatpush3.bf16.msra.mxu1 %v1003_v4  ;;  %909 = vmatprep.subr.bf16.mxu0 %v1070_v1  ;;  %v1009_v10 = vld [vmem:[%s1172_s23] sm:$0xff]   ;;  %v448_v15 = vshll.u32 %v1010_v11, 16  ;;  %v452_v21 = vshrl.u32 %v1010_v11, 16  ;;  %v456_v22 = vshll.u32 %v1013_v16, 16  ;;  %v1012_v24 = vld [vmem:[%s1172_s23 + $0x8] sm:$0xff]   ;;  %p257_p8 = scmp.lt.s32.totalorder %s254_s30, 15  ;;  %s1240_s21 = scalar_lea.vmem %s1272_s3, %s830_s13 }
  0x16   : > { %929 = vmatprep.subr.bf16.mxu1 %v1070_v1  ;;  %v441_v13 = vshrl.u32 %v1009_v10, 16  ;;  %v443_v14 = vshll.u32 %v1009_v10, 16  ;;  %v1015_v30 = vld [vmem:[%s1172_s23 + $0x10] sm:$0xff]   ;;  %v460_v31 = vshrl.u32 %v1013_v16, 16 }
  0x17   : > { %v450_v18 = vrot.slane %v448_v15, 1  ;;  %v458_v27 = vrot.slane %v456_v22, 1  ;;  %s1288_s30 = smov (!%p257_p8, %s254_s30), 15 }
  0x18   : > { %910 = vmatpush3.bf16.msra.mxu0 %v1004_v5  ;;  %v445_v17 = vrot.slane %v443_v14, 1  ;;  %s260_s8 = sadd.s32 %s826_s6, %s1288_s30 }
  0x19   : > { %930 = vmatpush3.bf16.msra.mxu1 %v1005_v6  ;;  %911 = vmatprep.subr.bf16.mxu0 %v1070_v1  ;;  %v454_v26 = vor.u32 %v452_v21, %v450_v18  ;;  %s829_s9 = sshll.u32 %s260_s8, 2  ;;  %v462_v32 = vor.u32 %v460_v31, %v458_v27 }
  0x1a   : > { %931 = vmatprep.subr.bf16.mxu1 %v1070_v1  ;;  %v446_v20 = vor.u32 %v445_v17, %v441_v13  ;;  %s262_s19 = scalar_lea.vmem %s1270_s1, %s829_s9 }
  0x1b   : > { %v459_v29 = vsel %vm439_vm2, %v454_v26, %v458_v27  ;;  %v567_v33 = vld [vmem:[%s262_s19] sm:$0x1] }
  0x1c   : > { %912 = vmatpush3.bf16.msra.mxu0 %v1006_v7  ;;  %v451_v23 = vsel %vm439_vm2, %v446_v20, %v450_v18 }
  0x1d   : > { %932 = vmatpush3.bf16.msra.mxu1 %v1007_v8  ;;  %945 = vmatprep.subr.bf16.mxu0 %v1070_v1 }
  0x1f   : > { %914 = vmatmul.mubr.msk.bf16.vlgmr.msra.gmra.mxu0 %vm329_vm1, %v1008_v9 }
  0x20   : > { %946 = vmatpush3.bf16.msra.mxu0 %v1011_v12  ;;  %917 = vmatprep.mubr.msk.bf16.mxu0 %vm1071_vm0, %v1070_v1 }
  0x21   : > { %947 = vmatprep.subr.bf16.mxu0 %v1070_v1  ;;  %934 = vmatmul.mubr.msk.bf16.vlgmr.msra.gmra.mxu1 %vm329_vm1, %v451_v23 }
  0x22   : > { %937 = vmatprep.mubr.msk.bf16.mxu1 %vm1071_vm0, %v1070_v1 }
  0x24   : > { %948 = vmatpush3.bf16.msra.mxu0 %v1014_v19 }
  0x25   : > { %949 = vmatprep.subr.bf16.mxu0 %v1070_v1 }
  0x27   : > { %918 = vmatmul.mubr.msk.bf16.gmra.mxu0 %vm329_vm1, %v1012_v24 }
  0x28   : > { %921 = vmatprep.mubr.msk.bf16.mxu0 %vm1071_vm0, %v1070_v1  ;;  %950 = vmatpush3.bf16.msra.mxu0 %v1016_v25 }
  0x29   : > { %951 = vmatprep.subr.bf16.mxu0 %v1070_v1  ;;  %938 = vmatmul.mubr.msk.bf16.gmra.mxu1 %vm329_vm1, %v459_v29 }
  0x2a   : > { %941 = vmatprep.mubr.msk.bf16.mxu1 %vm1071_vm0, %v1070_v1 }
  0x2c   : > { %952 = vmatpush3.bf16.msra.mxu0 %v1017_v28 }
  0x2f   : > { %922 = vmatmul.mubr.msk.bf16.gmra.mxu0 %vm329_vm1, %v1015_v30 }
  0x30   : > { %953 = vmatprep.mubr.msk.bf16.mxu0 %vm1071_vm0, %v1070_v1 }
  0x31   : > { %942 = vmatmul.mubr.msk.bf16.gmra.mxu1 %vm329_vm1, %v462_v32 }
  0x37   : > { %954 = vmatmul.mubr.msk.bf16.vlgmr.msra.gmra.mxu0 %vm329_vm1, %v567_v33 }
  0xdf   : > { %v373_v34 = vpop.f32.mrf.mxu0 }
  0xe0   : > { %397 = vst.msk [vmem:[#allocation2] sm:$0xff] %vm396_vm3, %v373_v34 }
  0xe1   : > { %v915_v35 = vpop.f32.mrf.mxu0  ;;  %v530_v37 = vpop.f32.mrf.mxu1 }
  0xe3   : > { %v376_v36 = vpop.f32.mrf.mxu0  ;;  %v935_v39 = vpop.f32.mrf.mxu1 }
  0xe4   : > { %398 = vst.msk [vmem:[#allocation2 + $0x8] sm:$0xff] %vm396_vm3, %v376_v36 }
  0xe5   : > { %v916_v38 = vpop.f32.mrf.mxu0  ;;  %v533_v43 = vpop.f32.mrf.mxu1 }
  0xe7   : > { %v403_v40 = vld [vmem:[#allocation2] sm:$0xff]  ;;  %v381_v41 = vpop.f32.mrf.mxu0  ;;  %v936_v45 = vpop.f32.mrf.mxu1 }
  0xe8   : > { %v553_v42 = vadd.f32 %v530_v37, %v403_v40  ;;  %399 = vst.msk [vmem:[#allocation2 + $0x10] sm:$0xff] %vm396_vm3, %v381_v41 }
  0xe9   : > { %v919_v44 = vpop.f32.mrf.mxu0  ;;  %v538_v49 = vpop.f32.mrf.mxu1 }
  0xea   : > { %559 = vst.msk [vmem:[#allocation2] sm:$0xff] %vm396_vm3, %v553_v42 }
  0xeb   : > { %v404_v46 = vld [vmem:[#allocation2 + $0x8] sm:$0xff]  ;;  %v384_v47 = vpop.f32.mrf.mxu0  ;;  %v939_v51 = vpop.f32.mrf.mxu1 }
  0xec   : > { %v554_v48 = vadd.f32 %v533_v43, %v404_v46  ;;  %400 = vst.msk [vmem:[#allocation2 + $0x18] sm:$0xff] %vm396_vm3, %v384_v47 }
  0xed   : > { %v920_v50 = vpop.f32.mrf.mxu0  ;;  %v541_v55 = vpop.f32.mrf.mxu1 }
  0xee   : > { %560 = vst.msk [vmem:[#allocation2 + $0x8] sm:$0xff] %vm396_vm3, %v554_v48 }
  0xef   : > { %v405_v52 = vld [vmem:[#allocation2 + $0x10] sm:$0xff]  ;;  %v389_v53 = vpop.f32.mrf.mxu0  ;;  %v940_v59 = vpop.f32.mrf.mxu1 }
  0xf0   : > { %v555_v54 = vadd.f32 %v538_v49, %v405_v52  ;;  %401 = vst.msk [vmem:[#allocation2 + $0x20] sm:$0xff] %vm396_vm3, %v389_v53 }
  0xf1   : > { %v646_v56 = vld [vmem:[#allocation2] sm:$0xff]  ;;  %v923_v57 = vpop.f32.mrf.mxu0  ;;  %v546_v63 = vpop.f32.mrf.mxu1 }
  0xf2   : > { %v658_v58 = vmul.f32 0.70710677, %v646_v56  ;;  %561 = vst.msk [vmem:[#allocation2 + $0x10] sm:$0xff] %vm396_vm3, %v555_v54  ;;  %v652_v22 = vmul.f32 0.5, %v646_v56 }
  0xf3   : > { %v406_v60 = vld [vmem:[#allocation2 + $0x18] sm:$0xff]  ;;  %v392_v61 = vpop.f32.mrf.mxu0  ;;  %v943_v3 = vpop.f32.mrf.mxu1 }
  0xf4   : > { %1018 = verf.f32 %v658_v58  ;;  %v556_v62 = vadd.f32 %v541_v55, %v406_v60  ;;  %402 = vst.msk [vmem:[#allocation2 + $0x28] sm:$0xff] %vm396_vm3, %v392_v61 }
  0xf5   : > { %v647_v0 = vld [vmem:[#allocation2 + $0x8] sm:$0xff]  ;;  %v924_v1 = vpop.f32.mrf.mxu0  ;;  %v549_v7 = vpop.f32.mrf.mxu1 }
  0xf6   : > { %v659_v2 = vmul.f32 0.70710677, %v647_v0  ;;  %562 = vst.msk [vmem:[#allocation2 + $0x18] sm:$0xff] %vm396_vm3, %v556_v62  ;;  %v653_v29 = vmul.f32 0.5, %v647_v0 }
  0xf7   : > { %v407_v4 = vld [vmem:[#allocation2 + $0x20] sm:$0xff]  ;;  %v637_v5 = vpop.f32.mrf.mxu0  ;;  %v944_v11 = vpop.f32.mrf.mxu1 }
  0xf8   : > { %1020 = verf.f32 %v659_v2  ;;  %v557_v6 = vadd.f32 %v546_v63, %v407_v4 }
  0xf9   : > { %v648_v8 = vld [vmem:[#allocation2 + $0x10] sm:$0xff]  ;;  %v955_v9 = vpop.f32.mrf.mxu0 }
  0xfa   : > { %v660_v10 = vmul.f32 0.70710677, %v648_v8  ;;  %563 = vst.msk [vmem:[#allocation2 + $0x20] sm:$0xff] %vm396_vm3, %v557_v6  ;;  %v654_v35 = vmul.f32 0.5, %v648_v8 }
  0xfb   : > { %v408_v12 = vld [vmem:[#allocation2 + $0x28] sm:$0x7f]  ;;  %v566_v13 = vld [vmem:[#allocation2 + $0x2f] sm:$0x1]  ;;  %v640_v14 = vpop.f32.mrf.mxu0 }
  0xfc   : > { %1022 = verf.f32 %v660_v10  ;;  %v558_v15 = vadd.f32 %v549_v7, %v408_v12  ;;  %v643_v16 = vadd.f32 %v637_v5, %v566_v13 }
  0xfd   : > { %v649_v17 = vld [vmem:[#allocation2 + $0x18] sm:$0xff]  ;;  %v956_v18 = vpop.f32.mrf.mxu0 }
  0xfe   : > { %v661_v19 = vmul.f32 0.70710677, %v649_v17  ;;  %565 = vst.msk [vmem:[#allocation2 + $0x28] sm:$0x7f] %vm564_vm4, %v558_v15  ;;  %v655_v40 = vmul.f32 0.5, %v649_v17 }
  0xff   : > { %645 = vst.msk [vmem:[#allocation2 + $0x2f] sm:$0x1] %vm644_vm5, %v643_v16 }
 0x100   : > { %1024 = verf.f32 %v661_v19 }
 0x101   : > { %v1019_v20 = vpop.eup %1018  ;;  %v650_v21 = vld [vmem:[#allocation2 + $0x20] sm:$0xff] }
 0x102   : > { %v670_v23 = vadd.f32 1.0, %v1019_v20  ;;  %v662_v24 = vmul.f32 0.70710677, %v650_v21  ;;  %v656_v45 = vmul.f32 0.5, %v650_v21 }
 0x104   : > { %v676_v25 = vmul.f32 %v670_v23, %v652_v22  ;;  %1026 = verf.f32 %v662_v24 }
 0x105   : > { %v1021_v26 = vpop.eup %1020 }
 0x106   : > { %v651_v27 = vld [vmem:[#allocation2 + $0x28] sm:$0xff]  ;;  %v880_v28 = vpack.c.bf16 %v676_v25, %v676_v25  ;;  %v671_v30 = vadd.f32 1.0, %v1021_v26 }
 0x107   : > { %v663_v31 = vmul.f32 0.70710677, %v651_v27  ;;  %v657_v50 = vmul.f32 0.5, %v651_v27 }
 0x108   : > { %707 = vst.msk [vmem:[%s1240_s21] sm:$0xf] %vm706_vm6, %v880_v28  ;;  %v677_v32 = vmul.f32 %v671_v30, %v653_v29 }
 0x109   : > { %1028 = verf.f32 %v663_v31  ;;  %v1023_v33 = vpop.eup %1022 }
 0x10a   : > { %v881_v34 = vpack.c.bf16 %v677_v32, %v677_v32  ;;  %v672_v36 = vadd.f32 1.0, %v1023_v33 }
 0x10c   : > { %708 = vst.msk [vmem:[%s1240_s21 + $0x4] sm:$0xf] %vm706_vm6, %v881_v34  ;;  %v678_v37 = vmul.f32 %v672_v36, %v654_v35 }
 0x10d   : > { %v1025_v38 = vpop.eup %1024 }
 0x10e   : > { %v882_v39 = vpack.c.bf16 %v678_v37, %v678_v37  ;;  %v673_v41 = vadd.f32 1.0, %v1025_v38 }
 0x110   : > { %709 = vst.msk [vmem:[%s1240_s21 + $0x8] sm:$0xf] %vm706_vm6, %v882_v39  ;;  %v679_v42 = vmul.f32 %v673_v41, %v655_v40 }
 0x111   : > { %v1027_v43 = vpop.eup %1026 }
 0x112   : > { %v883_v44 = vpack.c.bf16 %v679_v42, %v679_v42  ;;  %v674_v46 = vadd.f32 1.0, %v1027_v43 }
 0x114   : > { %710 = vst.msk [vmem:[%s1240_s21 + $0xc] sm:$0xf] %vm706_vm6, %v883_v44  ;;  %v680_v47 = vmul.f32 %v674_v46, %v656_v45 }
 0x116   : > { %v1029_v48 = vpop.eup %1028  ;;  %v884_v49 = vpack.c.bf16 %v680_v47, %v680_v47 }
 0x117   : > { %v675_v51 = vadd.f32 1.0, %v1029_v48 }
 0x118   : > { %711 = vst.msk [vmem:[%s1240_s21 + $0x10] sm:$0xf] %vm706_vm6, %v884_v49 }
 0x119   : > { %v681_v52 = vmul.f32 %v675_v51, %v657_v50 }
 0x11b   : > { %v885_v53 = vpack.c.bf16 %v681_v52, %v681_v52 }
 0x11d   : > { %712 = vst.msk [vmem:[%s1240_s21 + $0x14] sm:$0xf] %vm706_vm6, %v885_v53 }
 0x11e PF: > { %s13_s16 = sadd.s32 1, %s1068_s16   ;;  %s1273_s12 = smov %s1060_s14 }
 0x11f   : > { %p10_p9 = scmp.ge.s32.totalorder %s13_s16, 6   ;;  %s1274_s13 = smov %s1064_s15 }
 0x120   : > { %s1275_s14 = smov %s1278_s17  ;;  %s1276_s15 = smov %s1282_s18 }
 0x121   :  { %12 = sbr.rel (!%p10_p9) target bundleno = 3 (0x3), region = 66 }

// kernel: _lambda_.7
= control target key start
LH: loop header
LB: loop body
LE: loop exit
PB: predicated region body
PF: predicated region fallthrough
CT: control target
= control target key end

     0   :  { %s569_s9 = smov 0   ;;  %s571_s10 = smov 0   ;;  %s630_s0 = inlined_call_operand.vmem [shape: bf16[2,48,64], index: 0, kind: input, shape index: {}]   ;;  %s631_s1 = inlined_call_operand.vmem [shape: bf16[1,64,64], index: 1, kind: input, shape index: {}]   ;;  %s632_s2 = inlined_call_operand.vmem [shape: f32[2,48,64], index: 2, kind: output, shape index: {}]  }
   0x1   :  { %s573_s11 = smov 0  }
   0x2 LB: > { %s24_s12 = sadd.s32 1, %s546_s10  ;;  %p431_p0 = scmp.ge.s32.totalorder %s550_s11, 1  ;;  %s550_s11 = sphi %s573_s11, %s12_s11   ;;  %s546_s10 = sphi %s571_s10, %s634_s10   ;;  %s542_s9 = sphi %s569_s9, %s633_s9  }
   0x3   : > { %p26_p1 = scmp.ge.s32.totalorder %s24_s12, 2  ;;  %p133_p2 = scmp.lt.s32.totalorder %s550_s11, 3 }
   0x5   : > { %s636_s12 = smov (%p26_p1, %s24_s12), 0  ;;  %p134_p3 = pnand %p431_p0, %p133_p2 }
   0x6   : > { %p164_p4 = scmp.lt.s32.totalorder (!%p134_p3), %s542_s9, 1 }
   0x7   : > { %137 = sbr.rel (%p134_p3) target bundleno = 255 (0xff), region = 28 }
   0xc   : > { %v509_v0 = vld [vmem:[%s631_s1 + $0x18] sm:$0xff]   ;;  %v552_v1 = vmov 0.0   ;;  %v510_v2 = vld [vmem:[%s631_s1 + $0x10] sm:$0xff]   ;;  %vm553_vm0 = vmmov 0   ;;  %s638_s9 = smov (!%p164_p4, %s542_s9), 1  ;;  %v511_v3 = vld [vmem:[%s631_s1 + $0x8] sm:$0xff]  }
   0xd   : > { %453 = vmatprep.subr.bf16.mxu0 %v552_v1  ;;  %473 = vmatprep.subr.bf16.mxu1 %v552_v1  ;;  %s481_s19 = smul.u32 24, %s638_s9  ;;  %v512_v4 = vld [vmem:[%s631_s1] sm:$0xff]   ;;  %vm237_vm1 = vcmask 523264  }
   0xe   : > { %454 = vmatpush3.bf16.msra.mxu0 %v509_v0  ;;  %477 = vmatpush3.bf16.msra.mxu1 %v509_v0  ;;  %s482_s25 = smul.u32 48, %s638_s9 }
   0xf   : > { %455 = vmatprep.subr.bf16.mxu0 %v552_v1  ;;  %474 = vmatprep.subr.bf16.mxu1 %v552_v1  ;;  %s171_s22 = scalar_lea.vmem %s630_s0, %s481_s19 }
  0x10   : > { %461 = vmatprep.mubr.msk.bf16.mxu0 %vm553_vm0, %v552_v1  ;;  %465 = vmatprep.mubr.msk.bf16.mxu1 %vm553_vm0, %v552_v1  ;;  %v513_v5 = vld [vmem:[%s171_s22] sm:$0xff]   ;;  %v514_v6 = vld [vmem:[%s171_s22 + $0x8] sm:$0xff]   ;;  %v515_v7 = vld [vmem:[%s171_s22 + $0x10] sm:$0xff]   ;;  %s181_s28 = scalar_lea.vmem %s632_s2, %s482_s25 }
  0x12   : > { %456 = vmatpush3.bf16.msra.mxu0 %v510_v2  ;;  %478 = vmatpush3.bf16.msra.mxu1 %v510_v2 }
  0x13   : > { %457 = vmatprep.subr.bf16.mxu0 %v552_v1  ;;  %475 = vmatprep.subr.bf16.mxu1 %v552_v1 }
  0x16   : > { %458 = vmatpush3.bf16.msra.mxu0 %v511_v3  ;;  %479 = vmatpush3.bf16.msra.mxu1 %v511_v3 }
  0x17   : > { %459 = vmatprep.subr.bf16.mxu0 %v552_v1  ;;  %476 = vmatprep.subr.bf16.mxu1 %v552_v1 }
  0x1a   : > { %460 = vmatpush3.bf16.msra.mxu0 %v512_v4  ;;  %480 = vmatpush3.bf16.msra.mxu1 %v512_v4 }
  0x1d   : > { %462 = vmatmul.mubr.msk.bf16.vlgmr.msra.gmra.mxu0 %vm237_vm1, %v513_v5  ;;  %466 = vmatmul.mubr.msk.bf16.vlgmr.msra.gmra.mxu1 %vm237_vm1, %v514_v6 }
  0x1e   : > { %469 = vmatprep.mubr.msk.bf16.mxu1 %vm553_vm0, %v552_v1 }
  0x25   : > { %470 = vmatmul.mubr.msk.bf16.gmra.mxu1 %vm237_vm1, %v515_v7 }
  0xdd   : > { %v281_v8 = vpop.f32.mrf.mxu0  ;;  %v289_v9 = vpop.f32.mrf.mxu1 }
  0xde   : > { %v310_v10 = vmul.f32 0.70710677, %v281_v8  ;;  %v312_v11 = vmul.f32 0.70710677, %v289_v9  ;;  %v304_v28 = vmul.f32 0.5, %v281_v8  ;;  %v306_v30 = vmul.f32 0.5, %v289_v9 }
  0xdf   : > { %v463_v12 = vpop.f32.mrf.mxu0  ;;  %v467_v13 = vpop.f32.mrf.mxu1 }
  0xe0   : > { %516 = verf.f32 %v310_v10 }
  0xe1   : > { %518 = verf.f32 %v312_v11  ;;  %v284_v14 = vpop.f32.mrf.mxu0  ;;  %v292_v15 = vpop.f32.mrf.mxu1 }
  0xe2   : > { %v311_v16 = vmul.f32 0.70710677, %v284_v14  ;;  %v313_v17 = vmul.f32 0.70710677, %v292_v15  ;;  %v305_v36 = vmul.f32 0.5, %v284_v14  ;;  %v307_v38 = vmul.f32 0.5, %v292_v15 }
  0xe3   : > { %v468_v18 = vpop.f32.mrf.mxu1  ;;  %v464_v19 = vpop.f32.mrf.mxu0 }
  0xe4   : > { %520 = verf.f32 %v311_v16 }
  0xe5   : > { %522 = verf.f32 %v313_v17  ;;  %v297_v20 = vpop.f32.mrf.mxu1 }
  0xe6   : > { %v314_v21 = vmul.f32 0.70710677, %v297_v20  ;;  %v308_v43 = vmul.f32 0.5, %v297_v20 }
  0xe7   : > { %v471_v22 = vpop.f32.mrf.mxu1 }
  0xe8   : > { %524 = verf.f32 %v314_v21 }
  0xe9   : > { %v300_v23 = vpop.f32.mrf.mxu1 }
  0xea   : > { %v315_v24 = vmul.f32 0.70710677, %v300_v23  ;;  %v309_v47 = vmul.f32 0.5, %v300_v23 }
  0xeb   : > { %v472_v25 = vpop.f32.mrf.mxu1 }
  0xec   : > { %526 = verf.f32 %v315_v24 }
  0xed   : > { %v517_v26 = vpop.eup %516 }
  0xee   : > { %v519_v27 = vpop.eup %518  ;;  %v322_v29 = vadd.f32 1.0, %v517_v26 }
  0xef   : > { %v324_v31 = vadd.f32 1.0, %v519_v27 }
  0xf0   : > { %v328_v32 = vmul.f32 %v322_v29, %v304_v28 }
  0xf1   : > { %v521_v33 = vpop.eup %520  ;;  %v330_v34 = vmul.f32 %v324_v31, %v306_v30 }
  0xf2   : > { %v523_v35 = vpop.eup %522  ;;  %334 = vst.msk [vmem:[%s181_s28] sm:$0xff] %vm237_vm1, %v328_v32  ;;  %v323_v37 = vadd.f32 1.0, %v521_v33 }
  0xf3   : > { %336 = vst.msk [vmem:[%s181_s28 + $0x10] sm:$0xff] %vm237_vm1, %v330_v34  ;;  %v325_v39 = vadd.f32 1.0, %v523_v35 }
  0xf4   : > { %v329_v40 = vmul.f32 %v323_v37, %v305_v36 }
  0xf5   : > { %v525_v41 = vpop.eup %524  ;;  %v331_v42 = vmul.f32 %v325_v39, %v307_v38 }
  0xf6   : > { %335 = vst.msk [vmem:[%s181_s28 + $0x8] sm:$0xff] %vm237_vm1, %v329_v40  ;;  %v326_v44 = vadd.f32 1.0, %v525_v41 }
  0xf7   : > { %337 = vst.msk [vmem:[%s181_s28 + $0x18] sm:$0xff] %vm237_vm1, %v331_v42 }
  0xf8   : > { %v332_v45 = vmul.f32 %v326_v44, %v308_v43 }
  0xf9   : > { %v527_v46 = vpop.eup %526 }
  0xfa   : > { %338 = vst.msk [vmem:[%s181_s28 + $0x20] sm:$0xff] %vm237_vm1, %v332_v45  ;;  %v327_v48 = vadd.f32 1.0, %v527_v46 }
  0xfc   : > { %v333_v49 = vmul.f32 %v327_v48, %v309_v47 }
  0xfe   : > { %339 = vst.msk [vmem:[%s181_s28 + $0x28] sm:$0xff] %vm237_vm1, %v333_v49 }
  0xff PF: > { %s12_s11 = sadd.s32 1, %s550_s11   ;;  %s633_s9 = smov %s546_s10 }
 0x100   : > { %p9_p5 = scmp.ge.s32.totalorder %s12_s11, 4   ;;  %s634_s10 = smov %s636_s12 }
 0x102   :  { %11 = sbr.rel (!%p9_p5) target bundleno = 2 (0x2), region = 58 }

</bundles_post_ra>
